<compile_context>
chip_gen: v5e
topology: v5e:2x2
jax: 0.10.0
libtpu: 0.0.40
codegen_flags: <defaults>
</compile_context>

<pallas_src>
import functools
import math

import jax
import jax.numpy as jnp
from jax import lax
from jax.experimental import pallas as pl
from jax.experimental.pallas import tpu as pltpu

BN_EPS = 1e-5
LANE = 128

# rows of the fused per-feature stats scratch (8, fout_p)
_SUM1, _SSQ1, _SC1, _SH1, _SUM2, _SSQ2, _SC2, _SH2 = range(8)


def _gelu_exact(x):
    # nn.GELU default: 0.5 * x * (1 + erf(x / sqrt(2)))  (exact erf variant)
    # TODO(synk): jax.nn.gelu(approximate=True) would move this onto the EUP slot.
    return 0.5 * x * (1.0 + lax.erf(x * 0.7071067811865475))


def _round_up(n, m):
    return (n + m - 1) // m * m


def _pad2(a, rows, cols, fill=0.0):
    pr, pc = rows - a.shape[0], cols - a.shape[1]
    if pr == 0 and pc == 0:
        return a
    return jnp.pad(a, ((0, pr), (0, pc)), constant_values=fill)


def _residual_mlp_kernel(
    x_ref, w1_ref, g1_ref, be1_ref, w2_ref, b2_ref, g2_ref, be2_ref,   # inputs
    o_ref,                                                             # output
    stats_ref,                                                         # (8, fout_p) f32
    *cache_refs,                                                       # h1 [, h2] caches
    inv_b, is_res, same_fs, is_out, cache_acts, cache_dtype,
):
    p = pl.program_id(0)   # phase
    j = pl.program_id(1)   # batch tile
    last = 1 if is_out else 2

    def gemm1():
        # b1 omitted: training-mode BN subtracts the per-feature batch mean,
        # which cancels a constant bias exactly.
        return jnp.dot(x_ref[...], w1_ref[...], preferred_element_type=jnp.float32)

    def gemm2(x1):
        return jnp.dot(x1.astype(jnp.bfloat16), w2_ref[...],
                       preferred_element_type=jnp.float32)

    def get_h1():
        if cache_acts:
            return cache_refs[0][j].astype(jnp.float32)
        return gemm1()

    def get_x1():
        return _gelu_exact(get_h1() * stats_ref[_SC1:_SC1 + 1, :]
                           + stats_ref[_SH1:_SH1 + 1, :])

    def accumulate(row, h):
        stats_ref[row:row + 1, :] += jnp.sum(h, axis=0, keepdims=True)
        stats_ref[row + 1:row + 2, :] += jnp.sum(h * h, axis=0, keepdims=True)

    def finalize(row, g_ref, be_ref):
        # TODO(synk): single-pass E[x^2]-mean^2 variance; move to shifted/Welford
        # accumulation if tolerances tighten.
        mu = stats_ref[row:row + 1, :] * inv_b
        var = jnp.maximum(stats_ref[row + 1:row + 2, :] * inv_b - mu * mu, 0.0)
        sc = g_ref[...] * lax.rsqrt(var + BN_EPS)          # gamma folded into rsqrt
        stats_ref[row + 2:row + 3, :] = sc
        stats_ref[row + 3:row + 4, :] = be_ref[...] - mu * sc

    def write_out(x2, x1):
        if is_res:
            res = x_ref[...].astype(jnp.float32) if same_fs else x1
            out = (res + x2) * (1.0 / 1.414)
        else:
            out = x2
        o_ref[...] = out.astype(o_ref.dtype)

    # ---------- phase 0: GEMM1 once, cache h1, accumulate BN1 stats ----------
    @pl.when(p == 0)
    def _phase0():
        @pl.when(j == 0)
        def _():
            stats_ref[...] = jnp.zeros_like(stats_ref)
        h1 = gemm1()
        if cache_acts:
            cache_refs[0][j] = h1.astype(cache_dtype)
        accumulate(_SUM1, h1)

    # ---------- phase 1: BN1 + GELU, GEMM2 once ----------
    @pl.when(p == 1)
    def _phase1():
        @pl.when(j == 0)
        def _():
            finalize(_SUM1, g1_ref, be1_ref)
        x1 = get_x1()
        h2 = gemm2(x1)
        if is_out:
            # final block: second layer is a plain Linear (bias kept, no BN/GELU)
            write_out(h2 + b2_ref[...], x1)
        else:
            if cache_acts:
                cache_refs[1][j] = h2.astype(cache_dtype)
            accumulate(_SUM2, h2)

    # ---------- phase 2 (non-out only): BN2 + GELU, residual, write ----------
    if not is_out:
        @pl.when(p == last)
        def _phase2():
            @pl.when(j == 0)
            def _():
                finalize(_SUM2, g2_ref, be2_ref)
            need_x1 = (not cache_acts) or (is_res and not same_fs)
            x1 = get_x1() if need_x1 else None        # from h1 cache: no matmul
            h2 = cache_refs[1][j].astype(jnp.float32) if cache_acts else gemm2(x1)
            x2 = _gelu_exact(h2 * stats_ref[_SC2:_SC2 + 1, :]
                             + stats_ref[_SH2:_SH2 + 1, :])
            write_out(x2, x1)


def residual_mlp_block(x, params, *, is_res: bool, is_out: bool, batch_tile=None):
    """x: [B, in_fs] float32.  params: dict from init_params (PyTorch layout)."""
    B, in_fs = x.shape
    out_fs = params["w1"].shape[1]
    same_fs = in_fs == out_fs

    fin_p = _round_up(in_fs, LANE)
    fout_p = _round_up(out_fs, LANE)

    # ---- batch tiling (batch is NEVER padded: it would corrupt BN statistics) ----
    if batch_tile is None:
        if B <= 1024:
            batch_tile = B
        else:
            batch_tile = next((t for t in range(1024, 15, -16) if B % t == 0), B)
    if B % batch_tile != 0 or (batch_tile % 16 != 0 and batch_tile != B):
        batch_tile = B
    nb = B // batch_tile
    n_phases = 2 if is_out else 3
    last = n_phases - 1

    # ---- lane-dense zero padding of the feature dims; x streams in bf16 ----
    # TODO(synk): accept pre-padded bf16 inputs / mask the feature tail in-kernel to
    # avoid these wrapper-side copies and the output slice below.
    xp = _pad2(x, B, fin_p).astype(jnp.bfloat16)
    w1 = _pad2(params["w1"], fin_p, fout_p).astype(jnp.bfloat16)
    w2 = _pad2(params["w2"], fout_p, fout_p).astype(jnp.bfloat16)
    g1 = _pad2(params["g1"], 1, fout_p, fill=1.0)
    be1 = _pad2(params["be1"], 1, fout_p)
    b2 = _pad2(params["b2"], 1, fout_p)
    g2 = _pad2(params["g2"], 1, fout_p, fill=1.0)
    be2 = _pad2(params["be2"], 1, fout_p)

    # ---- VMEM budget -> activation-cache plan ----
    fixed_bytes = (
        2 * batch_tile * fin_p * 2             # x tile   (bf16, double-buffered)
        + 2 * batch_tile * fout_p * 4          # out tile (f32, double-buffered)
        + 2 * (fin_p + fout_p) * fout_p * 2    # w1, w2   (bf16, double-buffered)
        # TODO(synk): on v7x (64 MiB VMEM) single-buffer the resident weights with
        # pipeline_mode=pl.Buffered(1) and/or add a K/N weight-tiling grid axis.
        + 2 * 5 * fout_p * 4                   # g1/be1/b2/g2/be2
        + 8 * fout_p * 4                       # fused BN stats scratch
    )
    n_caches = 1 if is_out else 2
    cache_elems = n_caches * nb * batch_tile * fout_p
    try:
        phys_vmem = int(getattr(pltpu.get_tpu_info(), "vmem_capacity_bytes",
                                128 * 2 ** 20))
    except Exception:
        phys_vmem = 128 * 2 ** 20
    budget = min(int(0.8 * phys_vmem), 100 * 2 ** 20)

    if fixed_bytes + 4 * cache_elems <= budget:
        cache_acts, cache_dtype = True, jnp.float32
    elif fixed_bytes + 2 * cache_elems <= budget:
        cache_acts, cache_dtype = True, jnp.bfloat16
    else:
        cache_acts, cache_dtype = False, jnp.float32     # recompute fallback

    cache_itemsize = 4 if cache_dtype == jnp.float32 else 2
    used = fixed_bytes + (cache_elems * cache_itemsize if cache_acts else 0)
    vmem_limit = int(max(min(int(1.5 * used), budget), used, 32 * 2 ** 20))

    # ---- phase-aware index maps: only advance blocks in phases that use them ----
    if (not cache_acts) or (is_out and is_res and same_fs):
        x_map = lambda p, j: (j, 0)                          # x read every phase
    elif is_res and same_fs:                                 # x read in phases 0 and 2
        x_map = lambda p, j: (jnp.where(p == 1, 0, j), 0)
    else:                                                    # x read only in phase 0
        x_map = lambda p, j: (jnp.where(p == 0, j, 0), 0)

    out_map = lambda p, j: (jnp.where(p == last, j, 0), 0)   # writeback only at the end

    def resident(shape):  # loaded once, stays in VMEM (constant block index)
        return pl.BlockSpec(shape, lambda p, j: (0,) * len(shape))

    in_specs = [
        pl.BlockSpec((batch_tile, fin_p), x_map),                 # x (streams, bf16)
        resident((fin_p, fout_p)),                                # w1 (bf16)
        resident((1, fout_p)), resident((1, fout_p)),             # g1, be1
        resident((fout_p, fout_p)),                               # w2 (bf16)
        resident((1, fout_p)), resident((1, fout_p)), resident((1, fout_p)),  # b2,g2,be2
    ]
    out_spec = pl.BlockSpec((batch_tile, fout_p), out_map)

    scratch = [pltpu.VMEM((8, fout_p), jnp.float32)]              # fused BN stats
    if cache_acts:
        scratch.append(pltpu.VMEM((nb, batch_tile, fout_p), cache_dtype))      # h1
        if not is_out:
            scratch.append(pltpu.VMEM((nb, batch_tile, fout_p), cache_dtype))  # h2

    kernel = functools.partial(
        _residual_mlp_kernel,
        inv_b=1.0 / B, is_res=is_res, same_fs=same_fs, is_out=is_out,
        cache_acts=cache_acts, cache_dtype=cache_dtype,
    )

    out_padded = pl.pallas_call(
        kernel,
        out_shape=jax.ShapeDtypeStruct((B, fout_p), jnp.float32),
        grid_spec=pltpu.PrefetchScalarGridSpec(
            num_scalar_prefetch=0,
            grid=(n_phases, nb),
            in_specs=in_specs,
            out_specs=out_spec,
            scratch_shapes=scratch,
        ),
        compiler_params=pltpu.CompilerParams(
            # BN statistics / activation caches are carried across both axes.
            dimension_semantics=("arbitrary", "arbitrary"),
            vmem_limit_bytes=vmem_limit,
        ),
    )(xp, w1, g1, be1, w2, b2, g2, be2)

    return out_padded[:, :out_fs] if fout_p != out_fs else out_padded


def init_params(key, in_fs, out_fs):
    """nn.Linear weights stored transposed as [in, out]; biases/BN params as [1, out]."""
    k1, k2, k3, k4 = jax.random.split(key, 4)
    bound1 = 1.0 / math.sqrt(in_fs)
    bound2 = 1.0 / math.sqrt(out_fs)
    return {
        "w1": jax.random.uniform(k1, (in_fs, out_fs), jnp.float32, -bound1, bound1),
        "b1": jax.random.uniform(k2, (1, out_fs), jnp.float32, -bound1, bound1),
        "g1": jnp.ones((1, out_fs), jnp.float32),
        "be1": jnp.zeros((1, out_fs), jnp.float32),
        "w2": jax.random.uniform(k3, (out_fs, out_fs), jnp.float32, -bound2, bound2),
        "b2": jax.random.uniform(k4, (1, out_fs), jnp.float32, -bound2, bound2),
        "g2": jnp.ones((1, out_fs), jnp.float32),
        "be2": jnp.zeros((1, out_fs), jnp.float32),
    }


def _batchnorm1d_train(h, gamma, beta):
    mu = jnp.mean(h, axis=0, keepdims=True)
    var = jnp.mean(jnp.square(h - mu), axis=0, keepdims=True)
    return (h - mu) * lax.rsqrt(var + BN_EPS) * gamma + beta


def _reference(x, p, *, is_res, is_out):
    """Pure-JAX transcription of the PyTorch forward (training-mode BN, biases
    included) with the same bf16-operand / f32-accumulation matmuls as the kernel."""
    bf = jnp.bfloat16
    w1b, w2b = p["w1"].astype(bf), p["w2"].astype(bf)
    h1 = jnp.dot(x.astype(bf), w1b, preferred_element_type=jnp.float32) + p["b1"]
    h1 = _batchnorm1d_train(h1, p["g1"], p["be1"])
    x1 = _gelu_exact(h1)
    h2 = jnp.dot(x1.astype(bf), w2b, preferred_element_type=jnp.float32) + p["b2"]
    if not is_out:
        h2 = _batchnorm1d_train(h2, p["g2"], p["be2"])
        x2 = _gelu_exact(h2)
    else:
        x2 = h2
    if is_res:
        res = x if x.shape[1] == x2.shape[1] else x1
        return (res + x2) / 1.414
    return x2


if __name__ == "__main__":
    key = jax.random.PRNGKey(0)
    configs = [
        # (B, in_fs, out_fs, is_res, is_out, batch_tile)
        (64, 128, 128, True, False, None),   # 3 phases, residual = x, single batch tile
        (64, 128, 128, True, True, None),    # is_out: plain Linear second layer (2 phases)
        (64, 96, 128, True, False, 32),      # feature-padding path, residual = x1, nb=2
        (64, 128, 128, False, False, None),  # no residual
    ]
    for idx, (B, fin, fout, is_res, is_out, tb) in enumerate(configs):
        kx, kp, key = jax.random.split(key, 3)
        x = jax.random.normal(kx, (B, fin), dtype=jnp.float32)
        params = init_params(kp, fin, fout)

        out = residual_mlp_block(x, params, is_res=is_res, is_out=is_out, batch_tile=tb)
        out = jax.block_until_ready(out)

        ref = _reference(x, params, is_res=is_res, is_out=is_out)
        assert out.shape == ref.shape, (out.shape, ref.shape)
        assert bool(jnp.all(jnp.isfinite(out)))
        err = float(jnp.max(jnp.abs(out - ref)))
        # x streams in bf16, so the same-width residual (res = x) is bf16-rounded.
        tol = 2e-2 if (is_res and fin == fout) else 1e-2
        assert err < tol, f"config {idx}: max abs err {err}"

    print("KERNEL_OK")
</pallas_src>

<mosaic_0001>
module attributes {stable_mosaic.version = 11 : i64} {
  func.func @_residual_mlp_kernel(%arg0: i32, %arg1: i32, %arg2: memref<64x128xbf16, #tpu.memory_space<vmem>>, %arg3: memref<128x128xbf16, #tpu.memory_space<vmem>>, %arg4: memref<1x128xf32, #tpu.memory_space<vmem>>, %arg5: memref<1x128xf32, #tpu.memory_space<vmem>>, %arg6: memref<128x128xbf16, #tpu.memory_space<vmem>>, %arg7: memref<1x128xf32, #tpu.memory_space<vmem>>, %arg8: memref<1x128xf32, #tpu.memory_space<vmem>>, %arg9: memref<1x128xf32, #tpu.memory_space<vmem>>, %arg10: memref<64x128xf32, #tpu.memory_space<vmem>>, %arg11: memref<8x128xf32, #tpu.memory_space<vmem>>, %arg12: memref<1x64x128xf32, #tpu.memory_space<vmem>>, %arg13: memref<1x64x128xf32, #tpu.memory_space<vmem>>) attributes {dimension_semantics = [#tpu.dimension_semantics<arbitrary>, #tpu.dimension_semantics<arbitrary>], iteration_bounds = array<i64: 3, 1>, scalar_prefetch = 0 : i64, scratch_operands = 3 : i64, tpu.core_type = #tpu.core_type<tc>, window_params = [{transform_indices = @transform_0, window_bounds = array<i64: 64, 128>}, {pipeline_mode = #tpu.pipeline_mode<synchronous>, transform_indices = @transform_1, window_bounds = array<i64: 128, 128>}, {pipeline_mode = #tpu.pipeline_mode<synchronous>, transform_indices = @transform_2, window_bounds = array<i64: 1, 128>}, {pipeline_mode = #tpu.pipeline_mode<synchronous>, transform_indices = @transform_3, window_bounds = array<i64: 1, 128>}, {pipeline_mode = #tpu.pipeline_mode<synchronous>, transform_indices = @transform_4, window_bounds = array<i64: 128, 128>}, {pipeline_mode = #tpu.pipeline_mode<synchronous>, transform_indices = @transform_5, window_bounds = array<i64: 1, 128>}, {pipeline_mode = #tpu.pipeline_mode<synchronous>, transform_indices = @transform_6, window_bounds = array<i64: 1, 128>}, {pipeline_mode = #tpu.pipeline_mode<synchronous>, transform_indices = @transform_7, window_bounds = array<i64: 1, 128>}, {transform_indices = @transform_8, window_bounds = array<i64: 64, 128>}]} {
    %c0_i32 = arith.constant 0 : i32
    %0 = arith.cmpi eq, %arg0, %c0_i32 : i32
    %1 = arith.extui %0 : i1 to i32
    %c0_i32_0 = arith.constant 0 : i32
    %2 = arith.cmpi ne, %1, %c0_i32_0 : i32
    scf.if %2 {
      %c0_i32_3 = arith.constant 0 : i32
      %9 = arith.cmpi eq, %arg1, %c0_i32_3 : i32
      %10 = arith.extui %9 : i1 to i32
      %c0_i32_4 = arith.constant 0 : i32
      %11 = arith.cmpi ne, %10, %c0_i32_4 : i32
      scf.if %11 {
        %cst_19 = arith.constant 0.000000e+00 : f32
        %30 = vector.broadcast %cst_19 : f32 to vector<8x128xf32>
        %c0_20 = arith.constant 0 : index
        %c0_21 = arith.constant 0 : index
        %31 = vector.load %arg11[%c0_20, %c0_21] : memref<8x128xf32, #tpu.memory_space<vmem>>, vector<8x128xf32>
        tpu.vector_store %arg11[%c0_20, %c0_21], %30 {strides = array<i32>} : memref<8x128xf32, #tpu.memory_space<vmem>>, vector<8x128xf32>,
      } else {
      }
      %c0 = arith.constant 0 : index
      %c0_5 = arith.constant 0 : index
      %12 = vector.load %arg2[%c0, %c0_5] : memref<64x128xbf16, #tpu.memory_space<vmem>>, vector<64x128xbf16>
      %c0_6 = arith.constant 0 : index
      %c0_7 = arith.constant 0 : index
      %13 = vector.load %arg3[%c0_6, %c0_7] : memref<128x128xbf16, #tpu.memory_space<vmem>>, vector<128x128xbf16>
      %cst = arith.constant dense<0.000000e+00> : vector<64x128xf32>
      %14 = tpu.matmul %12, %13, %cst {dimension_numbers = #tpu.dot_dimension_numbers<[1], [0], [0], [1], [0, 0, 1, 1], [], []>} : vector<64x128xbf16>, vector<128x128xbf16>, vector<64x128xf32> -> vector<64x128xf32>
      %15 = arith.index_cast %arg1 : i32 to index
      %c0_8 = arith.constant 0 : index
      %c0_9 = arith.constant 0 : index
      %16 = vector.load %arg12[%15, %c0_8, %c0_9] : memref<1x64x128xf32, #tpu.memory_space<vmem>>, vector<1x64x128xf32>
      %17 = vector.shape_cast %16 : vector<1x64x128xf32> to vector<64x128xf32>
      %18 = vector.shape_cast %14 : vector<64x128xf32> to vector<1x64x128xf32>
      tpu.vector_store %arg12[%15, %c0_8, %c0_9], %18 {strides = array<i32>} : memref<1x64x128xf32, #tpu.memory_space<vmem>>, vector<1x64x128xf32>,
      %c0_10 = arith.constant 0 : index
      %c0_11 = arith.constant 0 : index
      %19 = vector.load %arg11[%c0_10, %c0_11] : memref<8x128xf32, #tpu.memory_space<vmem>>, vector<1x128xf32>
      %cst_12 = arith.constant dense<0.000000e+00> : vector<128xf32>
      %20 = vector.multi_reduction <add>, %14, %cst_12 [0] : vector<64x128xf32> to vector<128xf32>
      %21 = vector.shape_cast %20 : vector<128xf32> to vector<1x128xf32>
      %22 = arith.addf %19, %21 : vector<1x128xf32>
      %c0_13 = arith.constant 0 : index
      %c0_14 = arith.constant 0 : index
      %23 = vector.load %arg11[%c0_13, %c0_14] : memref<8x128xf32, #tpu.memory_space<vmem>>, vector<1x128xf32>
      tpu.vector_store %arg11[%c0_13, %c0_14], %22 {strides = array<i32>} : memref<8x128xf32, #tpu.memory_space<vmem>>, vector<1x128xf32>,
      %c1 = arith.constant 1 : index
      %c0_15 = arith.constant 0 : index
      %24 = vector.load %arg11[%c1, %c0_15] : memref<8x128xf32, #tpu.memory_space<vmem>>, vector<1x128xf32>
      %25 = arith.mulf %14, %14 : vector<64x128xf32>
      %cst_16 = arith.constant dense<0.000000e+00> : vector<128xf32>
      %26 = vector.multi_reduction <add>, %25, %cst_16 [0] : vector<64x128xf32> to vector<128xf32>
      %27 = vector.shape_cast %26 : vector<128xf32> to vector<1x128xf32>
      %28 = arith.addf %24, %27 : vector<1x128xf32>
      %c1_17 = arith.constant 1 : index
      %c0_18 = arith.constant 0 : index
      %29 = vector.load %arg11[%c1_17, %c0_18] : memref<8x128xf32, #tpu.memory_space<vmem>>, vector<1x128xf32>
      tpu.vector_store %arg11[%c1_17, %c0_18], %28 {strides = array<i32>} : memref<8x128xf32, #tpu.memory_space<vmem>>, vector<1x128xf32>,
    } else {
    }
    %c1_i32 = arith.constant 1 : i32
    %3 = arith.cmpi eq, %arg0, %c1_i32 : i32
    %4 = arith.extui %3 : i1 to i32
    %c0_i32_1 = arith.constant 0 : i32
    %5 = arith.cmpi ne, %4, %c0_i32_1 : i32
    scf.if %5 {
      %c0_i32_3 = arith.constant 0 : i32
      %9 = arith.cmpi eq, %arg1, %c0_i32_3 : i32
      %10 = arith.extui %9 : i1 to i32
      %c0_i32_4 = arith.constant 0 : i32
      %11 = arith.cmpi ne, %10, %c0_i32_4 : i32
      scf.if %11 {
        %c0_23 = arith.constant 0 : index
        %c0_24 = arith.constant 0 : index
        %47 = vector.load %arg11[%c0_23, %c0_24] : memref<8x128xf32, #tpu.memory_space<vmem>>, vector<1x128xf32>
        %cst_25 = arith.constant 1.562500e-02 : f32
        %48 = vector.broadcast %cst_25 : f32 to vector<1x128xf32>
        %49 = arith.mulf %47, %48 : vector<1x128xf32>
        %c1 = arith.constant 1 : index
        %c0_26 = arith.constant 0 : index
        %50 = vector.load %arg11[%c1, %c0_26] : memref<8x128xf32, #tpu.memory_space<vmem>>, vector<1x128xf32>
        %cst_27 = arith.constant 1.562500e-02 : f32
        %51 = vector.broadcast %cst_27 : f32 to vector<1x128xf32>
        %52 = arith.mulf %50, %51 : vector<1x128xf32>
        %53 = arith.mulf %49, %49 : vector<1x128xf32>
        %54 = arith.subf %52, %53 : vector<1x128xf32>
        %cst_28 = arith.constant 0.000000e+00 : f32
        %55 = vector.broadcast %cst_28 : f32 to vector<1x128xf32>
        %56 = arith.maximumf %54, %55 : vector<1x128xf32>
        %c0_29 = arith.constant 0 : index
        %c0_30 = arith.constant 0 : index
        %57 = vector.load %arg4[%c0_29, %c0_30] : memref<1x128xf32, #tpu.memory_space<vmem>>, vector<1x128xf32>
        %cst_31 = arith.constant 9.99999974E-6 : f32
        %58 = vector.broadcast %cst_31 : f32 to vector<1x128xf32>
        %59 = arith.addf %56, %58 : vector<1x128xf32>
        %60 = math.rsqrt %59 : vector<1x128xf32>
        %61 = arith.mulf %57, %60 : vector<1x128xf32>
        %c2_32 = arith.constant 2 : index
        %c0_33 = arith.constant 0 : index
        %62 = vector.load %arg11[%c2_32, %c0_33] : memref<8x128xf32, #tpu.memory_space<vmem>>, vector<1x128xf32>
        tpu.vector_store %arg11[%c2_32, %c0_33], %61 {strides = array<i32>} : memref<8x128xf32, #tpu.memory_space<vmem>>, vector<1x128xf32>,
        %c0_34 = arith.constant 0 : index
        %c0_35 = arith.constant 0 : index
        %63 = vector.load %arg5[%c0_34, %c0_35] : memref<1x128xf32, #tpu.memory_space<vmem>>, vector<1x128xf32>
        %64 = arith.mulf %49, %61 : vector<1x128xf32>
        %65 = arith.subf %63, %64 : vector<1x128xf32>
        %c3_36 = arith.constant 3 : index
        %c0_37 = arith.constant 0 : index
        %66 = vector.load %arg11[%c3_36, %c0_37] : memref<8x128xf32, #tpu.memory_space<vmem>>, vector<1x128xf32>
        tpu.vector_store %arg11[%c3_36, %c0_37], %65 {strides = array<i32>} : memref<8x128xf32, #tpu.memory_space<vmem>>, vector<1x128xf32>,
      } else {
      }
      %12 = arith.index_cast %arg1 : i32 to index
      %c0 = arith.constant 0 : index
      %c0_5 = arith.constant 0 : index
      %13 = vector.load %arg12[%12, %c0, %c0_5] : memref<1x64x128xf32, #tpu.memory_space<vmem>>, vector<1x64x128xf32>
      %14 = vector.shape_cast %13 : vector<1x64x128xf32> to vector<64x128xf32>
      %c2 = arith.constant 2 : index
      %c0_6 = arith.constant 0 : index
      %15 = vector.load %arg11[%c2, %c0_6] : memref<8x128xf32, #tpu.memory_space<vmem>>, vector<1x128xf32>
      %16 = vector.broadcast %15 : vector<1x128xf32> to vector<64x128xf32>
      %17 = arith.mulf %14, %16 : vector<64x128xf32>
      %c3 = arith.constant 3 : index
      %c0_7 = arith.constant 0 : index
      %18 = vector.load %arg11[%c3, %c0_7] : memref<8x128xf32, #tpu.memory_space<vmem>>, vector<1x128xf32>
      %19 = vector.broadcast %18 : vector<1x128xf32> to vector<64x128xf32>
      %20 = arith.addf %17, %19 : vector<64x128xf32>
      %cst = arith.constant 5.000000e-01 : f32
      %21 = vector.broadcast %cst : f32 to vector<64x128xf32>
      %22 = arith.mulf %21, %20 : vector<64x128xf32>
      %cst_8 = arith.constant 0.707106769 : f32
      %23 = vector.broadcast %cst_8 : f32 to vector<64x128xf32>
      %24 = arith.mulf %20, %23 : vector<64x128xf32>
      %25 = math.erf %24 : vector<64x128xf32>
      %cst_9 = arith.constant 1.000000e+00 : f32
      %26 = vector.broadcast %cst_9 : f32 to vector<64x128xf32>
      %27 = arith.addf %26, %25 : vector<64x128xf32>
      %28 = arith.mulf %22, %27 : vector<64x128xf32>
      %29 = arith.truncf %28 : vector<64x128xf32> to vector<64x128xbf16>
      %c0_10 = arith.constant 0 : index
      %c0_11 = arith.constant 0 : index
      %30 = vector.load %arg6[%c0_10, %c0_11] : memref<128x128xbf16, #tpu.memory_space<vmem>>, vector<128x128xbf16>
      %cst_12 = arith.constant dense<0.000000e+00> : vector<64x128xf32>
      %31 = tpu.matmul %29, %30, %cst_12 {dimension_numbers = #tpu.dot_dimension_numbers<[1], [0], [0], [1], [0, 0, 1, 1], [], []>} : vector<64x128xbf16>, vector<128x128xbf16>, vector<64x128xf32> -> vector<64x128xf32>
      %32 = arith.index_cast %arg1 : i32 to index
      %c0_13 = arith.constant 0 : index
      %c0_14 = arith.constant 0 : index
      %33 = vector.load %arg13[%32, %c0_13, %c0_14] : memref<1x64x128xf32, #tpu.memory_space<vmem>>, vector<1x64x128xf32>
      %34 = vector.shape_cast %33 : vector<1x64x128xf32> to vector<64x128xf32>
      %35 = vector.shape_cast %31 : vector<64x128xf32> to vector<1x64x128xf32>
      tpu.vector_store %arg13[%32, %c0_13, %c0_14], %35 {strides = array<i32>} : memref<1x64x128xf32, #tpu.memory_space<vmem>>, vector<1x64x128xf32>,
      %c4 = arith.constant 4 : index
      %c0_15 = arith.constant 0 : index
      %36 = vector.load %arg11[%c4, %c0_15] : memref<8x128xf32, #tpu.memory_space<vmem>>, vector<1x128xf32>
      %cst_16 = arith.constant dense<0.000000e+00> : vector<128xf32>
      %37 = vector.multi_reduction <add>, %31, %cst_16 [0] : vector<64x128xf32> to vector<128xf32>
      %38 = vector.shape_cast %37 : vector<128xf32> to vector<1x128xf32>
      %39 = arith.addf %36, %38 : vector<1x128xf32>
      %c4_17 = arith.constant 4 : index
      %c0_18 = arith.constant 0 : index
      %40 = vector.load %arg11[%c4_17, %c0_18] : memref<8x128xf32, #tpu.memory_space<vmem>>, vector<1x128xf32>
      tpu.vector_store %arg11[%c4_17, %c0_18], %39 {strides = array<i32>} : memref<8x128xf32, #tpu.memory_space<vmem>>, vector<1x128xf32>,
      %c5 = arith.constant 5 : index
      %c0_19 = arith.constant 0 : index
      %41 = vector.load %arg11[%c5, %c0_19] : memref<8x128xf32, #tpu.memory_space<vmem>>, vector<1x128xf32>
      %42 = arith.mulf %31, %31 : vector<64x128xf32>
      %cst_20 = arith.constant dense<0.000000e+00> : vector<128xf32>
      %43 = vector.multi_reduction <add>, %42, %cst_20 [0] : vector<64x128xf32> to vector<128xf32>
      %44 = vector.shape_cast %43 : vector<128xf32> to vector<1x128xf32>
      %45 = arith.addf %41, %44 : vector<1x128xf32>
      %c5_21 = arith.constant 5 : index
      %c0_22 = arith.constant 0 : index
      %46 = vector.load %arg11[%c5_21, %c0_22] : memref<8x128xf32, #tpu.memory_space<vmem>>, vector<1x128xf32>
      tpu.vector_store %arg11[%c5_21, %c0_22], %45 {strides = array<i32>} : memref<8x128xf32, #tpu.memory_space<vmem>>, vector<1x128xf32>,
    } else {
    }
    %c2_i32 = arith.constant 2 : i32
    %6 = arith.cmpi eq, %arg0, %c2_i32 : i32
    %7 = arith.extui %6 : i1 to i32
    %c0_i32_2 = arith.constant 0 : i32
    %8 = arith.cmpi ne, %7, %c0_i32_2 : i32
    scf.if %8 {
      %c0_i32_3 = arith.constant 0 : i32
      %9 = arith.cmpi eq, %arg1, %c0_i32_3 : i32
      %10 = arith.extui %9 : i1 to i32
      %c0_i32_4 = arith.constant 0 : i32
      %11 = arith.cmpi ne, %10, %c0_i32_4 : i32
      scf.if %11 {
        %c4 = arith.constant 4 : index
        %c0_15 = arith.constant 0 : index
        %35 = vector.load %arg11[%c4, %c0_15] : memref<8x128xf32, #tpu.memory_space<vmem>>, vector<1x128xf32>
        %cst_16 = arith.constant 1.562500e-02 : f32
        %36 = vector.broadcast %cst_16 : f32 to vector<1x128xf32>
        %37 = arith.mulf %35, %36 : vector<1x128xf32>
        %c5 = arith.constant 5 : index
        %c0_17 = arith.constant 0 : index
        %38 = vector.load %arg11[%c5, %c0_17] : memref<8x128xf32, #tpu.memory_space<vmem>>, vector<1x128xf32>
        %cst_18 = arith.constant 1.562500e-02 : f32
        %39 = vector.broadcast %cst_18 : f32 to vector<1x128xf32>
        %40 = arith.mulf %38, %39 : vector<1x128xf32>
        %41 = arith.mulf %37, %37 : vector<1x128xf32>
        %42 = arith.subf %40, %41 : vector<1x128xf32>
        %cst_19 = arith.constant 0.000000e+00 : f32
        %43 = vector.broadcast %cst_19 : f32 to vector<1x128xf32>
        %44 = arith.maximumf %42, %43 : vector<1x128xf32>
        %c0_20 = arith.constant 0 : index
        %c0_21 = arith.constant 0 : index
        %45 = vector.load %arg8[%c0_20, %c0_21] : memref<1x128xf32, #tpu.memory_space<vmem>>, vector<1x128xf32>
        %cst_22 = arith.constant 9.99999974E-6 : f32
        %46 = vector.broadcast %cst_22 : f32 to vector<1x128xf32>
        %47 = arith.addf %44, %46 : vector<1x128xf32>
        %48 = math.rsqrt %47 : vector<1x128xf32>
        %49 = arith.mulf %45, %48 : vector<1x128xf32>
        %c6_23 = arith.constant 6 : index
        %c0_24 = arith.constant 0 : index
        %50 = vector.load %arg11[%c6_23, %c0_24] : memref<8x128xf32, #tpu.memory_space<vmem>>, vector<1x128xf32>
        tpu.vector_store %arg11[%c6_23, %c0_24], %49 {strides = array<i32>} : memref<8x128xf32, #tpu.memory_space<vmem>>, vector<1x128xf32>,
        %c0_25 = arith.constant 0 : index
        %c0_26 = arith.constant 0 : index
        %51 = vector.load %arg9[%c0_25, %c0_26] : memref<1x128xf32, #tpu.memory_space<vmem>>, vector<1x128xf32>
        %52 = arith.mulf %37, %49 : vector<1x128xf32>
        %53 = arith.subf %51, %52 : vector<1x128xf32>
        %c7_27 = arith.constant 7 : index
        %c0_28 = arith.constant 0 : index
        %54 = vector.load %arg11[%c7_27, %c0_28] : memref<8x128xf32, #tpu.memory_space<vmem>>, vector<1x128xf32>
        tpu.vector_store %arg11[%c7_27, %c0_28], %53 {strides = array<i32>} : memref<8x128xf32, #tpu.memory_space<vmem>>, vector<1x128xf32>,
      } else {
      }
      %12 = arith.index_cast %arg1 : i32 to index
      %c0 = arith.constant 0 : index
      %c0_5 = arith.constant 0 : index
      %13 = vector.load %arg13[%12, %c0, %c0_5] : memref<1x64x128xf32, #tpu.memory_space<vmem>>, vector<1x64x128xf32>
      %14 = vector.shape_cast %13 : vector<1x64x128xf32> to vector<64x128xf32>
      %c6 = arith.constant 6 : index
      %c0_6 = arith.constant 0 : index
      %15 = vector.load %arg11[%c6, %c0_6] : memref<8x128xf32, #tpu.memory_space<vmem>>, vector<1x128xf32>
      %16 = vector.broadcast %15 : vector<1x128xf32> to vector<64x128xf32>
      %17 = arith.mulf %14, %16 : vector<64x128xf32>
      %c7 = arith.constant 7 : index
      %c0_7 = arith.constant 0 : index
      %18 = vector.load %arg11[%c7, %c0_7] : memref<8x128xf32, #tpu.memory_space<vmem>>, vector<1x128xf32>
      %19 = vector.broadcast %18 : vector<1x128xf32> to vector<64x128xf32>
      %20 = arith.addf %17, %19 : vector<64x128xf32>
      %cst = arith.constant 5.000000e-01 : f32
      %21 = vector.broadcast %cst : f32 to vector<64x128xf32>
      %22 = arith.mulf %21, %20 : vector<64x128xf32>
      %cst_8 = arith.constant 0.707106769 : f32
      %23 = vector.broadcast %cst_8 : f32 to vector<64x128xf32>
      %24 = arith.mulf %20, %23 : vector<64x128xf32>
      %25 = math.erf %24 : vector<64x128xf32>
      %cst_9 = arith.constant 1.000000e+00 : f32
      %26 = vector.broadcast %cst_9 : f32 to vector<64x128xf32>
      %27 = arith.addf %26, %25 : vector<64x128xf32>
      %28 = arith.mulf %22, %27 : vector<64x128xf32>
      %c0_10 = arith.constant 0 : index
      %c0_11 = arith.constant 0 : index
      %29 = vector.load %arg2[%c0_10, %c0_11] : memref<64x128xbf16, #tpu.memory_space<vmem>>, vector<64x128xbf16>
      %30 = arith.extf %29 : vector<64x128xbf16> to vector<64x128xf32>
      %31 = arith.addf %30, %28 : vector<64x128xf32>
      %cst_12 = arith.constant 0.70721358 : f32
      %32 = vector.broadcast %cst_12 : f32 to vector<64x128xf32>
      %33 = arith.mulf %31, %32 : vector<64x128xf32>
      %c0_13 = arith.constant 0 : index
      %c0_14 = arith.constant 0 : index
      %34 = vector.load %arg10[%c0_13, %c0_14] : memref<64x128xf32, #tpu.memory_space<vmem>>, vector<64x128xf32>
      tpu.vector_store %arg10[%c0_13, %c0_14], %33 {strides = array<i32>} : memref<64x128xf32, #tpu.memory_space<vmem>>, vector<64x128xf32>,
    } else {
    }
    return
  }
  func.func @transform_0(%arg0: i32, %arg1: i32) -> (i32, i32) {
    %c1_i32 = arith.constant 1 : i32
    %0 = arith.cmpi eq, %arg0, %c1_i32 : i32
    %c0_i32 = arith.constant 0 : i32
    %1 = arith.select %0, %c0_i32, %arg1 : i32
    %c0_i32_0 = arith.constant 0 : i32
    %c0_i32_1 = arith.constant 0 : i32
    return %1, %c0_i32_0 : i32, i32
  }
  func.func @transform_1(%arg0: i32, %arg1: i32) -> (i32, i32) {
    %c0_i32 = arith.constant 0 : i32
    %c0_i32_0 = arith.constant 0 : i32
    %c0_i32_1 = arith.constant 0 : i32
    return %c0_i32, %c0_i32_0 : i32, i32
  }
  func.func @transform_2(%arg0: i32, %arg1: i32) -> (i32, i32) {
    %c0_i32 = arith.constant 0 : i32
    %c0_i32_0 = arith.constant 0 : i32
    %c0_i32_1 = arith.constant 0 : i32
    return %c0_i32, %c0_i32_0 : i32, i32
  }
  func.func @transform_3(%arg0: i32, %arg1: i32) -> (i32, i32) {
    %c0_i32 = arith.constant 0 : i32
    %c0_i32_0 = arith.constant 0 : i32
    %c0_i32_1 = arith.constant 0 : i32
    return %c0_i32, %c0_i32_0 : i32, i32
  }
  func.func @transform_4(%arg0: i32, %arg1: i32) -> (i32, i32) {
    %c0_i32 = arith.constant 0 : i32
    %c0_i32_0 = arith.constant 0 : i32
    %c0_i32_1 = arith.constant 0 : i32
    return %c0_i32, %c0_i32_0 : i32, i32
  }
  func.func @transform_5(%arg0: i32, %arg1: i32) -> (i32, i32) {
    %c0_i32 = arith.constant 0 : i32
    %c0_i32_0 = arith.constant 0 : i32
    %c0_i32_1 = arith.constant 0 : i32
    return %c0_i32, %c0_i32_0 : i32, i32
  }
  func.func @transform_6(%arg0: i32, %arg1: i32) -> (i32, i32) {
    %c0_i32 = arith.constant 0 : i32
    %c0_i32_0 = arith.constant 0 : i32
    %c0_i32_1 = arith.constant 0 : i32
    return %c0_i32, %c0_i32_0 : i32, i32
  }
  func.func @transform_7(%arg0: i32, %arg1: i32) -> (i32, i32) {
    %c0_i32 = arith.constant 0 : i32
    %c0_i32_0 = arith.constant 0 : i32
    %c0_i32_1 = arith.constant 0 : i32
    return %c0_i32, %c0_i32_0 : i32, i32
  }
  func.func @transform_8(%arg0: i32, %arg1: i32) -> (i32, i32) {
    %c2_i32 = arith.constant 2 : i32
    %0 = arith.cmpi eq, %arg0, %c2_i32 : i32
    %c0_i32 = arith.constant 0 : i32
    %1 = arith.select %0, %arg1, %c0_i32 : i32
    %c0_i32_0 = arith.constant 0 : i32
    %c0_i32_1 = arith.constant 0 : i32
    return %1, %c0_i32_0 : i32, i32
  }
}

</mosaic_0001>

<bundles_post_ra>
// kernel: tpu_custom_call.1
= control target key start
LH: loop header
LB: loop body
LE: loop exit
PB: predicated region body
PF: predicated region fallthrough
CT: control target
= control target key end

     0   :  { %13 = vsyncpa [#allocation6], 0  ;;  %s2852_s0 = inlined_call_operand.hbm [shape: bf16[64,128], index: 0, kind: input, shape index: {}]   ;;  %s2853_s1 = inlined_call_operand.hbm [shape: bf16[128,128], index: 1, kind: input, shape index: {}]   ;;  %s2854_s2 = inlined_call_operand.vmem [shape: f32[1,128], index: 2, kind: input, shape index: {}]   ;;  %s2855_s3 = inlined_call_operand.vmem [shape: f32[1,128], index: 3, kind: input, shape index: {}]   ;;  %s2856_s4 = inlined_call_operand.hbm [shape: bf16[128,128], index: 4, kind: input, shape index: {}]   ;;  %s2857_s5 = inlined_call_operand.vmem [shape: f32[1,128], index: 5, kind: input, shape index: {}]   ;;  %s2858_s6 = inlined_call_operand.vmem [shape: f32[1,128], index: 6, kind: input, shape index: {}]   ;;  %s2859_s7 = inlined_call_operand.vmem [shape: f32[1,128], index: 7, kind: input, shape index: {}]   ;;  %s2860_s8 = inlined_call_operand.hbm [shape: f32[64,128], index: 8, kind: output, shape index: {}]  }
   0x1   :  { %15 = vsyncpa [#allocation6 + $0x1], 0 }
   0x2   :  { %16 = vsyncpa [#allocation9], 0 }
   0x3   :  { %17 = vsyncpa [#allocation7], 0 }
   0x4   :  { %19 = vsyncpa [#allocation7 + $0x1], 0  ;;  %s2236_s27 = smov 0   ;;  %s2238_s28 = smov 0  }
   0x5   :  { %s2240_s29 = smov 0  }
   0x6 LB: > { %s1713_s5 = sadd.s32 4294967295, %s2180_s29   ;;  %s1714_s30 = sadd.s32 4294967294, %s2180_s29   ;;  %s2180_s29 = sphi %s2240_s29, %s25_s29   ;;  %s2176_s28 = sphi %s2238_s28, %s2884_s28   ;;  %s2172_s27 = sphi %s2236_s27, %s2883_s27  }
   0x7   : > { %s37_s9 = sadd.s32 1, %s2176_s28  ;;  %p1715_p0 = scmp.ge.s32.totalorder %s2180_s29, 1 }
   0x8   : > { %p39_p1 = scmp.ge.s32.totalorder %s37_s9, 3  ;;  %p249_p2 = scmp.lt.s32.totalorder %s2180_s29, 4 }
   0x9   : > { %p2258_p3 = scmp.eq.s32.totalorder %s1713_s5, 0  ;;  %s260_s14 = sshll.u32 %s2853_s1, 4  ;;  %s261_s14 = int_to_ptr.hbm [resolvable:$true] %s260_s14 }
   0xa   : > { %s2886_s9 = smov (%p39_p1, %s37_s9), 0  ;;  %p2264_p4 = pnand %p1715_p0, %p249_p2 }
   0xb   : > { %s2182_s15 = smov [#allocation8]   ;;  %s280_s19 = sshll.u32 %s2856_s4, 4  ;;  %s281_s19 = int_to_ptr.hbm [resolvable:$true] %s280_s19 }
   0xc   : > { %p1930_p5 = pneg %p2264_p4  ;;  %s262_s16 = sshll.u32 %s2182_s15, 4  ;;  %s263_s16 = int_to_ptr.vmem [resolvable:$true] %s262_s16 }
   0xd   : > { %s2183_s20 = smov 64   ;;  %s2184_s21 = smov 4  }
   0xe   : > { %p1931_p6 = pnand %p2258_p3, %p1930_p5  ;;  %s2185_s22 = smov [#allocation10]  }
   0xf   : > { %s282_s23 = sshll.u32 %s2185_s22, 4  ;;  %p1947_p7 = scmp.lt.s32.totalorder %s2180_s29, 3  ;;  %s283_s23 = int_to_ptr.vmem [resolvable:$true] %s282_s23 }
  0x10   : > { %1933 = dma.hbm_to_vmem [thread:$0]  (!%p1931_p6), %s261_s14, 1024, %s263_s16, [#allocation9], %s2183_s20, %s2183_s20, %s2184_s21  }
  0x11   : > { %p1948_p8 = scmp.eq.s32.totalorder %s2180_s29, 0  ;;  %s317_s26 = sshll.u32 %s2852_s0, 4  ;;  %s318_s26 = int_to_ptr.hbm [resolvable:$true] %s317_s26 }
  0x12   : > { %1936 = dma.hbm_to_vmem [thread:$0]  (!%p1931_p6), %s281_s19, 1024, %s283_s23, [#allocation9], %s2183_s20, %s2183_s20, %s2184_s21  }
  0x13   : > { %s2186_s12 = smov [#allocation5]   ;;  %p1938_p9 = pnand %p1948_p8, %p1947_p7 }
  0x14   : > { %s319_s13 = sshll.u32 %s2186_s12, 4  ;;  %331 = sbr.rel (%p2264_p4) target bundleno = 727 (0x2d7), region = 52  ;;  %s320_s13 = int_to_ptr.vmem [resolvable:$true] %s319_s13 }
  0x15   : > { %1940 = dma.hbm_to_vmem [thread:$0]  (!%p1938_p9), %s318_s26, 512, %s320_s13, [#allocation6], %s2183_s20, %s2183_s20, %s2184_s21  }
  0x19   : > { %2159 = dma.done.wait (%p2258_p3), [#allocation6], 512  }
  0x1a   : > { %2161 = vsyncadd (%p2258_p3), [#allocation6], 4294966784 }
  0x1b   : > { %2163 = dma.done.wait (%p2258_p3), [#allocation9], 2048  }
  0x1c   : > { %2165 = vsyncadd (%p2258_p3), [#allocation9], 4294965248  ;;  %p1724_p10 = scmp.ne.s32.totalorder %s2172_s27, 0 }
  0x1e   : > { %390 = sbr.rel (%p1724_p10) target bundleno = 232 (0xe8), region = 68 }
  0x23   : > { %v1838_v0 = vld [vmem:[#allocation8 + $0x38] sm:$0xff]  ;;  %v1837_v1 = vld [vmem:[#allocation8 + $0x30] sm:$0xff]  ;;  %v1836_v2 = vld [vmem:[#allocation8 + $0x28] sm:$0xff]  ;;  %v2187_v12 = vmov 0.0  }
  0x24   : > { %492 = vmatpush.bf16.msra.mxu0 %v1838_v0  ;;  %1866 = vmatpush.bf16.msra.mxu1 %v1838_v0  ;;  %v1835_v3 = vld [vmem:[#allocation8 + $0x20] sm:$0xff]  ;;  %v1834_v4 = vld [vmem:[#allocation8 + $0x18] sm:$0xff]  ;;  %v1833_v5 = vld [vmem:[#allocation8 + $0x10] sm:$0xff]  ;;  %395 = vst [vmem:[#allocation2] sm:$0xff] %v2187_v12 }
  0x25   : > { %1867 = vmatpush.bf16.msra.mxu2 %v1838_v0  ;;  %1868 = vmatpush.bf16.msra.mxu3 %v1838_v0  ;;  %v1832_v6 = vld [vmem:[#allocation8 + $0x8] sm:$0xff]  ;;  %v1831_v7 = vld [vmem:[#allocation8] sm:$0xff]  ;;  %v1829_v10 = vld [vmem:[#allocation5 + $0x10] sm:$0xff] }
  0x26   : > { %v1827_v8 = vld [vmem:[#allocation5] sm:$0xff]  ;;  %v1828_v9 = vld [vmem:[#allocation5 + $0x8] sm:$0xff]  ;;  %v1830_v11 = vld [vmem:[#allocation5 + $0x18] sm:$0xff] }
  0x28   : > { %493 = vmatpush.bf16.msra.mxu0 %v1837_v1  ;;  %1869 = vmatpush.bf16.msra.mxu1 %v1837_v1 }
  0x29   : > { %1870 = vmatpush.bf16.msra.mxu2 %v1837_v1  ;;  %1871 = vmatpush.bf16.msra.mxu3 %v1837_v1 }
  0x2b   : > { %v531_v52 = vld [vmem:[#allocation2] sm:$0x1]  ;;  %v547_v55 = vld [vmem:[#allocation2 + $0x1] sm:$0x1] }
  0x2c   : > { %494 = vmatpush.bf16.msra.mxu0 %v1836_v2  ;;  %1872 = vmatpush.bf16.msra.mxu1 %v1836_v2 }
  0x2d   : > { %1873 = vmatpush.bf16.msra.mxu2 %v1836_v2  ;;  %1874 = vmatpush.bf16.msra.mxu3 %v1836_v2 }
  0x30   : > { %495 = vmatpush.bf16.msra.mxu0 %v1835_v3  ;;  %1875 = vmatpush.bf16.msra.mxu1 %v1835_v3 }
  0x31   : > { %1876 = vmatpush.bf16.msra.mxu2 %v1835_v3  ;;  %1877 = vmatpush.bf16.msra.mxu3 %v1835_v3 }
  0x34   : > { %496 = vmatpush.bf16.msra.mxu0 %v1834_v4  ;;  %1878 = vmatpush.bf16.msra.mxu1 %v1834_v4 }
  0x35   : > { %1879 = vmatpush.bf16.msra.mxu2 %v1834_v4  ;;  %1880 = vmatpush.bf16.msra.mxu3 %v1834_v4 }
  0x38   : > { %497 = vmatpush.bf16.msra.mxu0 %v1833_v5  ;;  %1881 = vmatpush.bf16.msra.mxu1 %v1833_v5 }
  0x39   : > { %1882 = vmatpush.bf16.msra.mxu2 %v1833_v5  ;;  %1883 = vmatpush.bf16.msra.mxu3 %v1833_v5 }
  0x3c   : > { %498 = vmatpush.bf16.msra.mxu0 %v1832_v6  ;;  %1884 = vmatpush.bf16.msra.mxu1 %v1832_v6 }
  0x3d   : > { %1885 = vmatpush.bf16.msra.mxu2 %v1832_v6  ;;  %1886 = vmatpush.bf16.msra.mxu3 %v1832_v6 }
  0x40   : > { %499 = vmatpush.bf16.msra.mxu0 %v1831_v7  ;;  %1887 = vmatpush.bf16.msra.mxu1 %v1831_v7 }
  0x41   : > { %1888 = vmatpush.bf16.msra.mxu2 %v1831_v7  ;;  %1889 = vmatpush.bf16.msra.mxu3 %v1831_v7 }
  0x43   : > { %500 = vmatmul.bf16.vlgmr.msra.gmra.mxu0 %v1827_v8  ;;  %505 = vmatmul.bf16.vlgmr.msra.gmra.mxu1 %v1828_v9 }
  0x44   : > { %510 = vmatmul.bf16.vlgmr.msra.gmra.mxu2 %v1829_v10  ;;  %515 = vmatmul.bf16.vlgmr.msra.gmra.mxu3 %v1830_v11 }
  0xc0   : > { %v501_v13 = vpop.f32.mrf.mxu0  ;;  %v506_v14 = vpop.f32.mrf.mxu1 }
  0xc1   : > { %523 = vst [vmem:[#allocation3 + $0x30] sm:$0xff] %v501_v13  ;;  %v548_v19 = vmul.f32 %v501_v13, %v501_v13  ;;  %v550_v22 = vmul.f32 %v506_v14, %v506_v14 }
  0xc2   : > { %525 = vst [vmem:[#allocation3 + $0x18] sm:$0xff] %v506_v14 }
  0xc7   : > { %v511_v15 = vpop.f32.mrf.mxu2  ;;  %v516_v16 = vpop.f32.mrf.mxu3 }
  0xc8   : > { %527 = vst [vmem:[#allocation3 + $0x8] sm:$0xff] %v511_v15  ;;  %v503_v17 = vpop.f32.mrf.mxu0  ;;  %v508_v18 = vpop.f32.mrf.mxu1  ;;  %v552_v28 = vmul.f32 %v511_v15, %v511_v15  ;;  %v554_v36 = vmul.f32 %v516_v16, %v516_v16 }
  0xc9   : > { %529 = vst [vmem:[#allocation3 + $0x28] sm:$0xff] %v516_v16  ;;  %v532_v20 = vadd.f32 %v503_v17, %v501_v13  ;;  %v549_v21 = vmul.f32 %v503_v17, %v503_v17  ;;  %v551_v26 = vmul.f32 %v508_v18, %v508_v18 }
  0xca   : > { %524 = vst [vmem:[#allocation3] sm:$0xff] %v503_v17 }
  0xcb   : > { %v556_v23 = vadd.f32 %v549_v21, %v548_v19  ;;  %526 = vst [vmem:[#allocation3 + $0x10] sm:$0xff] %v508_v18  ;;  %v533_v24 = vadd.f32 %v532_v20, %v506_v14 }
  0xcd   : > { %v534_v25 = vadd.f32 %v533_v24, %v508_v18  ;;  %v557_v27 = vadd.f32 %v556_v23, %v550_v22 }
  0xcf   : > { %v558_v29 = vadd.f32 %v557_v27, %v551_v26  ;;  %v513_v30 = vpop.f32.mrf.mxu2  ;;  %v535_v31 = vadd.f32 %v534_v25, %v511_v15  ;;  %v518_v32 = vpop.f32.mrf.mxu3 }
  0xd0   : > { %528 = vst [vmem:[#allocation3 + $0x20] sm:$0xff] %v513_v30  ;;  %v553_v34 = vmul.f32 %v513_v30, %v513_v30  ;;  %v555_v40 = vmul.f32 %v518_v32, %v518_v32 }
  0xd1   : > { %v536_v33 = vadd.f32 %v535_v31, %v513_v30  ;;  %v559_v35 = vadd.f32 %v558_v29, %v552_v28  ;;  %530 = vst [vmem:[#allocation3 + $0x38] sm:$0xff] %v518_v32 }
  0xd3   : > { %v560_v37 = vadd.f32 %v559_v35, %v553_v34  ;;  %v537_v38 = vadd.f32 %v536_v33, %v516_v16 }
  0xd5   : > { %v538_v39 = vadd.f32 %v537_v38, %v518_v32  ;;  %v561_v41 = vadd.f32 %v560_v37, %v554_v36 }
  0xd7   : > { %v539_v42 = vrot.slane %v538_v39, 4  ;;  %v562_v43 = vadd.f32 %v561_v41, %v555_v40 }
  0xd9   : > { %v540_v44 = vadd.f32 %v539_v42, %v538_v39  ;;  %v563_v45 = vrot.slane %v562_v43, 4 }
  0xdb   : > { %v541_v46 = vrot.slane %v540_v44, 2  ;;  %v564_v47 = vadd.f32 %v563_v45, %v562_v43 }
  0xdd   : > { %v542_v48 = vadd.f32 %v541_v46, %v540_v44  ;;  %v565_v49 = vrot.slane %v564_v47, 2 }
  0xdf   : > { %v543_v50 = vrot.slane %v542_v48, 1  ;;  %v566_v51 = vadd.f32 %v565_v49, %v564_v47 }
  0xe1   : > { %v544_v53 = vadd.f32 %v543_v50, %v542_v48  ;;  %v567_v54 = vrot.slane %v566_v51, 1 }
  0xe3   : > { %v545_v56 = vadd.f32 %v544_v53, %v531_v52  ;;  %v568_v57 = vadd.f32 %v567_v54, %v566_v51 }
  0xe5   : > { %546 = vst [vmem:[#allocation2] sm:$0x1] %v545_v56  ;;  %v569_v58 = vadd.f32 %v568_v57, %v547_v55 }
  0xe7   : > { %570 = vst [vmem:[#allocation2 + $0x1] sm:$0x1] %v569_v58 }
  0xe8 PF: > { %p1773_p11 = scmp.ne.s32.totalorder %s2172_s27, 1 }
  0xea   : > { %574 = sbr.rel (%p1773_p11) target bundleno = 552 (0x228), region = 76 }
  0xef   : > { %v1846_v59 = vld [vmem:[#allocation10 + $0x38] sm:$0xff]  ;;  %v1845_v60 = vld [vmem:[#allocation10 + $0x30] sm:$0xff]  ;;  %v1844_v2 = vld [vmem:[#allocation10 + $0x28] sm:$0xff] }
  0xf0   : > { %1054 = vmatpush.bf16.msra.mxu0 %v1846_v59  ;;  %1890 = vmatpush.bf16.msra.mxu1 %v1846_v59  ;;  %v579_v61 = vld [vmem:[#allocation2] sm:$0x1]  ;;  %v581_v63 = vld [vmem:[#allocation2 + $0x1] sm:$0x1]  ;;  %v1843_v5 = vld [vmem:[#allocation10 + $0x20] sm:$0xff] }
  0xf1   : > { %1891 = vmatpush.bf16.msra.mxu2 %v1846_v59  ;;  %1892 = vmatpush.bf16.msra.mxu3 %v1846_v59  ;;  %v580_v62 = vmul.f32 0.015625, %v579_v61  ;;  %v582_v0 = vmul.f32 0.015625, %v581_v63  ;;  %v1842_v7 = vld [vmem:[#allocation10 + $0x18] sm:$0xff]  ;;  %v1841_v8 = vld [vmem:[#allocation10 + $0x10] sm:$0xff]  ;;  %v1840_v11 = vld [vmem:[#allocation10 + $0x8] sm:$0xff] }
  0xf2   : > { %v1839_v14 = vld [vmem:[#allocation10] sm:$0xff]  ;;  %v586_v16 = vld [vmem:[%s2854_s2] sm:$0x1]  ;;  %v606_v23 = vld [vmem:[#allocation3 + $0x30] sm:$0xff] }
  0xf3   : > { %v583_v1 = vmul.f32 %v580_v62, %v580_v62  ;;  %v600_v20 = vld [vmem:[%s2855_s3] sm:$0x1]  ;;  %v607_v24 = vld [vmem:[#allocation3] sm:$0xff]  ;;  %v609_v26 = vld [vmem:[#allocation3 + $0x10] sm:$0xff] }
  0xf4   : > { %1055 = vmatpush.bf16.msra.mxu0 %v1845_v60  ;;  %1893 = vmatpush.bf16.msra.mxu1 %v1845_v60  ;;  %v608_v25 = vld [vmem:[#allocation3 + $0x18] sm:$0xff]  ;;  %v610_v32 = vld [vmem:[#allocation3 + $0x8] sm:$0xff]  ;;  %v611_v53 = vld [vmem:[#allocation3 + $0x20] sm:$0xff] }
  0xf5   : > { %1894 = vmatpush.bf16.msra.mxu2 %v1845_v60  ;;  %1895 = vmatpush.bf16.msra.mxu3 %v1845_v60  ;;  %v584_v3 = vsub.f32 %v582_v0, %v583_v1 }
  0xf7   : > { %v585_v4 = vmax.f32 %v584_v3, 0.0 }
  0xf8   : > { %1056 = vmatpush.bf16.msra.mxu0 %v1844_v2  ;;  %1896 = vmatpush.bf16.msra.mxu1 %v1844_v2 }
  0xf9   : > { %1897 = vmatpush.bf16.msra.mxu2 %v1844_v2  ;;  %1898 = vmatpush.bf16.msra.mxu3 %v1844_v2  ;;  %v587_v6 = vadd.f32 1e-05, %v585_v4 }
  0xfb   : > { %1990 = vrsqrt.f32 %v587_v6  ;;  %vm594_vm0 = vweird.f32 %v587_v6 }
  0xfc   : > { %1057 = vmatpush.bf16.msra.mxu0 %v1843_v5  ;;  %1899 = vmatpush.bf16.msra.mxu1 %v1843_v5 }
  0xfd   : > { %1900 = vmatpush.bf16.msra.mxu2 %v1843_v5  ;;  %1901 = vmatpush.bf16.msra.mxu3 %v1843_v5 }
 0x100   : > { %1058 = vmatpush.bf16.msra.mxu0 %v1842_v7  ;;  %1902 = vmatpush.bf16.msra.mxu1 %v1842_v7 }
 0x101   : > { %v1991_v9 = vpop.eup %1990  ;;  %1903 = vmatpush.bf16.msra.mxu2 %v1842_v7  ;;  %1904 = vmatpush.bf16.msra.mxu3 %v1842_v7 }
 0x102   : > { %v589_v10 = vmul.f32 %v1991_v9, %v587_v6  ;;  %vm595_vm1 = vweird.f32 %v1991_v9 }
 0x103   : > { %vm596_vm2 = vmor %vm594_vm0, %vm595_vm1 }
 0x104   : > { %1059 = vmatpush.bf16.msra.mxu0 %v1841_v8  ;;  %1905 = vmatpush.bf16.msra.mxu1 %v1841_v8  ;;  %v590_v12 = vmul.f32 %v1991_v9, %v589_v10 }
 0x105   : > { %1906 = vmatpush.bf16.msra.mxu2 %v1841_v8  ;;  %1907 = vmatpush.bf16.msra.mxu3 %v1841_v8 }
 0x106   : > { %v591_v13 = vmul.f32 0.5, %v590_v12 }
 0x108   : > { %1060 = vmatpush.bf16.msra.mxu0 %v1840_v11  ;;  %1908 = vmatpush.bf16.msra.mxu1 %v1840_v11  ;;  %v592_v15 = vsub.f32 1.5, %v591_v13 }
 0x109   : > { %1909 = vmatpush.bf16.msra.mxu2 %v1840_v11  ;;  %1910 = vmatpush.bf16.msra.mxu3 %v1840_v11 }
 0x10a   : > { %v593_v17 = vmul.f32 %v1991_v9, %v592_v15 }
 0x10c   : > { %1061 = vmatpush.bf16.msra.mxu0 %v1839_v14  ;;  %1911 = vmatpush.bf16.msra.mxu1 %v1839_v14  ;;  %v597_v18 = vsel %vm596_vm2, %v1991_v9, %v593_v17 }
 0x10d   : > { %1912 = vmatpush.bf16.msra.mxu2 %v1839_v14  ;;  %1913 = vmatpush.bf16.msra.mxu3 %v1839_v14  ;;  %v598_v19 = vmul.f32 %v597_v18, %v586_v16 }
 0x10f   : > { %599 = vst [vmem:[#allocation2 + $0x2] sm:$0x1] %v598_v19  ;;  %v601_v21 = vmul.f32 %v598_v19, %v580_v62 }
 0x111   : > { %v602_v22 = vsub.f32 %v600_v20, %v601_v21 }
 0x113   : > { %603 = vst [vmem:[#allocation2 + $0x3] sm:$0x1] %v602_v22 }
 0x116   : > { %v2301_v27 = vld [vmem:[#allocation2 + $0x2] ss:$0 sm:$0xff] }
 0x117   : > { %v616_v28 = vmul.f32 %v2301_v27, %v606_v23  ;;  %v617_v29 = vmul.f32 %v2301_v27, %v607_v24  ;;  %v618_v30 = vmul.f32 %v2301_v27, %v608_v25  ;;  %v619_v31 = vmul.f32 %v2301_v27, %v609_v26 }
 0x118   : > { %v620_v34 = vmul.f32 %v2301_v27, %v610_v32  ;;  %v621_v3 = vmul.f32 %v2301_v27, %v611_v53 }
 0x11a   : > { %v2307_v33 = vld [vmem:[#allocation2 + $0x3] ss:$0 sm:$0xff] }
 0x11b   : > { %v626_v35 = vadd.f32 %v2307_v33, %v616_v28  ;;  %v2312_v36 = vadd.f32 %v2307_v33, %v617_v29  ;;  %v2315_v37 = vadd.f32 %v2307_v33, %v618_v30  ;;  %v2318_v38 = vadd.f32 %v2307_v33, %v619_v31 }
 0x11c   : > { %v2332_v43 = vadd.f32 %v2307_v33, %v620_v34  ;;  %v2371_v18 = vadd.f32 %v2307_v33, %v621_v3 }
 0x11d   : > { %v2320_v39 = vmul.f32 0.70710677, %v626_v35  ;;  %v2323_v40 = vmul.f32 0.70710677, %v2312_v36  ;;  %v2326_v41 = vmul.f32 0.70710677, %v2315_v37 }
 0x11e   : > { %v2329_v42 = vmul.f32 0.70710677, %v2318_v38  ;;  %v2346_v50 = vmul.f32 0.5, %v626_v35  ;;  %v2353_v54 = vmul.f32 0.70710677, %v2332_v43 }
 0x11f   : > { %v650_v44 = vmul.f32 %v2320_v39, %v2320_v39  ;;  %v690_v45 = vmul.f32 %v2323_v40, %v2323_v40  ;;  %v730_v46 = vmul.f32 %v2326_v41, %v2326_v41  ;;  %v2381_v35 = vmul.f32 0.70710677, %v2371_v18 }
 0x120   : > { %v770_v47 = vmul.f32 %v2329_v42, %v2329_v42 }
 0x121   : > { %v2342_v48 = vmin.f32 %v650_v44, 16.0  ;;  %v2344_v49 = vmin.f32 %v690_v45, 16.0  ;;  %v2348_v51 = vmin.f32 %v730_v46, 16.0 }
 0x122   : > { %v2350_v52 = vmin.f32 %v770_v47, 16.0 }
 0x123   : > { %v652_v55 = vmul.f32 2.1237322e-06, %v2342_v48  ;;  %v663_v56 = vmul.f32 3.8918573e-05, %v2342_v48  ;;  %v692_v57 = vmul.f32 2.1237322e-06, %v2344_v49 }
 0x124   : > { %v703_v58 = vmul.f32 3.8918573e-05, %v2344_v49  ;;  %v732_v59 = vmul.f32 2.1237322e-06, %v2348_v51  ;;  %v743_v60 = vmul.f32 3.8918573e-05, %v2348_v51 }
 0x125   : > { %v653_v61 = vadd.f32 0.00028619796, %v652_v55  ;;  %v664_v62 = vadd.f32 0.001143296, %v663_v56  ;;  %v693_v63 = vadd.f32 0.00028619796, %v692_v57 }
 0x126   : > { %v704_v0 = vadd.f32 0.001143296, %v703_v58  ;;  %v733_v1 = vadd.f32 0.00028619796, %v732_v59  ;;  %v744_v2 = vadd.f32 0.001143296, %v743_v60 }
 0x127   : > { %v654_v4 = vmul.f32 %v653_v61, %v2342_v48  ;;  %v665_v5 = vmul.f32 %v664_v62, %v2342_v48  ;;  %v694_v6 = vmul.f32 %v693_v63, %v2344_v49  ;;  %v772_v7 = vmul.f32 2.1237322e-06, %v2350_v52  ;;  %v612_v58 = vld [vmem:[#allocation3 + $0x28] sm:$0xff]  ;;  %v613_v59 = vld [vmem:[#allocation3 + $0x38] sm:$0xff] }
 0x128   : > { %v705_v8 = vmul.f32 %v704_v0, %v2344_v49  ;;  %v734_v9 = vmul.f32 %v733_v1, %v2348_v51  ;;  %v745_v10 = vmul.f32 %v744_v2, %v2348_v51  ;;  %v783_v11 = vmul.f32 3.8918573e-05, %v2350_v52 }
 0x129   : > { %v655_v12 = vadd.f32 0.0036580483, %v654_v4  ;;  %v666_v13 = vadd.f32 0.014752088, %v665_v5  ;;  %v695_v14 = vadd.f32 0.0036580483, %v694_v6 }
 0x12a   : > { %v706_v15 = vadd.f32 0.014752088, %v705_v8  ;;  %v735_v16 = vadd.f32 0.0036580483, %v734_v9  ;;  %v746_v17 = vadd.f32 0.014752088, %v745_v10 }
 0x12b   : > { %v656_v19 = vmul.f32 %v655_v12, %v2342_v48  ;;  %v667_v20 = vmul.f32 %v666_v13, %v2342_v48  ;;  %v696_v21 = vmul.f32 %v695_v14, %v2344_v49  ;;  %v773_v22 = vadd.f32 0.00028619796, %v772_v7 }
 0x12c   : > { %v707_v23 = vmul.f32 %v706_v15, %v2344_v49  ;;  %v736_v24 = vmul.f32 %v735_v16, %v2348_v51  ;;  %v747_v25 = vmul.f32 %v746_v17, %v2348_v51  ;;  %v784_v26 = vadd.f32 0.001143296, %v783_v11 }
 0x12d   : > { %v657_v28 = vadd.f32 0.05243302, %v656_v19  ;;  %v668_v29 = vadd.f32 0.112945676, %v667_v20  ;;  %v697_v30 = vadd.f32 0.05243302, %v696_v21  ;;  %v774_v31 = vmul.f32 %v773_v22, %v2350_v52 }
 0x12e   : > { %v708_v32 = vadd.f32 0.112945676, %v707_v23  ;;  %v737_v34 = vadd.f32 0.05243302, %v736_v24  ;;  %v748_v47 = vadd.f32 0.112945676, %v747_v25  ;;  %v785_v57 = vmul.f32 %v784_v26, %v2350_v52 }
 0x12f   : > { %v658_v44 = vmul.f32 %v657_v28, %v2342_v48  ;;  %v669_v45 = vmul.f32 %v668_v29, %v2342_v48  ;;  %v698_v46 = vmul.f32 %v697_v30, %v2344_v49  ;;  %v775_v56 = vadd.f32 0.0036580483, %v774_v31 }
 0x130   : > { %v709_v53 = vmul.f32 %v708_v32, %v2344_v49  ;;  %v738_v55 = vmul.f32 %v737_v34, %v2348_v51  ;;  %v749_v63 = vmul.f32 %v748_v47, %v2348_v51  ;;  %v786_v3 = vadd.f32 0.014752088, %v785_v57 }
 0x131   : > { %v659_v60 = vadd.f32 0.18741608, %v658_v44  ;;  %v670_v61 = vadd.f32 0.4994258, %v669_v45  ;;  %v699_v62 = vadd.f32 0.18741608, %v698_v46  ;;  %v776_v2 = vmul.f32 %v775_v56, %v2350_v52 }
 0x132   : > { %v710_v0 = vadd.f32 0.4994258, %v709_v53  ;;  %v739_v1 = vadd.f32 0.18741608, %v738_v55  ;;  %v750_v7 = vadd.f32 0.4994258, %v749_v63  ;;  %v787_v10 = vmul.f32 %v786_v3, %v2350_v52 }
 0x133   : > { %v660_v4 = vmul.f32 %v659_v60, %v2342_v48  ;;  %v671_v5 = vmul.f32 %v670_v61, %v2342_v48  ;;  %v700_v6 = vmul.f32 %v699_v62, %v2344_v49  ;;  %v777_v9 = vadd.f32 0.05243302, %v776_v2 }
 0x134   : > { %v711_v8 = vmul.f32 %v710_v0, %v2344_v49  ;;  %v810_v11 = vmul.f32 %v2353_v54, %v2353_v54  ;;  %v740_v13 = vmul.f32 %v739_v1, %v2348_v51  ;;  %v622_v14 = vmul.f32 %v2301_v27, %v612_v58 }
 0x135   : > { %v672_v12 = vadd.f32 1.0, %v671_v5  ;;  %v623_v15 = vmul.f32 %v2301_v27, %v613_v59  ;;  %v2402_v48 = vmul.f32 0.5, %v2312_v36  ;;  %v751_v17 = vmul.f32 %v750_v7, %v2348_v51 }
 0x136   : > { %v712_v16 = vadd.f32 1.0, %v711_v8  ;;  %v788_v49 = vadd.f32 0.112945676, %v787_v10  ;;  %v661_v19 = vadd.f32 1.1283791, %v660_v4  ;;  %v850_v21 = vmul.f32 %v2381_v35, %v2381_v35 }
 0x137   : > { %1992 = vrcp.f32 %v672_v12  ;;  %v701_v20 = vadd.f32 1.1283791, %v700_v6  ;;  %v682_v22 = vand.u32 2147483647, %v672_v12  ;;  %v684_v23 = vand.u32 2147483648, %v672_v12 }
 0x138   : > { %1994 = vrcp.f32 %v712_v16  ;;  %v778_v24 = vmul.f32 %v777_v9, %v2350_v52  ;;  %v741_v25 = vadd.f32 1.1283791, %v740_v13  ;;  %v2408_v27 = vmin.f32 %v810_v11, 16.0 }
 0x139   : > { %v2411_v36 = vadd.f32 %v2307_v33, %v622_v14  ;;  %v2414_v51 = vadd.f32 %v2307_v33, %v623_v15  ;;  %v722_v26 = vand.u32 2147483647, %v712_v16  ;;  %v724_v28 = vand.u32 2147483648, %v712_v16 }
 0x13a   : > { %v752_v29 = vadd.f32 1.0, %v751_v17  ;;  %v789_v30 = vmul.f32 %v788_v49, %v2350_v52  ;;  %v662_v31 = vmul.f32 %v661_v19, %v2320_v39  ;;  %vm678_vm3 = vweird.f32 %v672_v12 }
 0x13b   : > { %v702_v32 = vmul.f32 %v701_v20, %v2323_v40  ;;  %vm718_vm4 = vweird.f32 %v712_v16  ;;  %vm2419_vm5 = vcmp.eq.f32.partialorder %v682_v22, 8.507059e+37  ;;  %v685_v44 = vor.u32 1.1754944e-38, %v684_v23 }
 0x13c   : > { %1996 = vrcp.f32 %v752_v29  ;;  %v779_v45 = vadd.f32 0.18741608, %v778_v24  ;;  %v2424_v46 = vmul.f32 %v741_v25, %v2326_v41  ;;  %v790_v47 = vadd.f32 0.4994258, %v789_v30 }
 0x13d   : > { %v1993_v33 = vpop.eup %1992  ;;  %v812_v53 = vmul.f32 2.1237322e-06, %v2408_v27  ;;  %v823_v39 = vmul.f32 3.8918573e-05, %v2408_v27  ;;  %vm2428_vm6 = vcmp.eq.f32.partialorder %v722_v26, 8.507059e+37  ;;  %v725_v57 = vor.u32 1.1754944e-38, %v724_v28 }
 0x13e   : > { %v1995_v55 = vpop.eup %1994  ;;  %v674_v56 = vmul.f32 %v1993_v33, %v672_v12  ;;  %v762_v58 = vand.u32 2147483647, %v752_v29  ;;  %vm679_vm7 = vweird.f32 %v1993_v33  ;;  %v764_v60 = vand.u32 2147483648, %v752_v29 }
 0x13f   : > { %v714_v59 = vmul.f32 %v1995_v55, %v712_v16  ;;  %v791_v61 = vmul.f32 %v790_v47, %v2350_v52  ;;  %v813_v62 = vadd.f32 0.00028619796, %v812_v53  ;;  %v824_v63 = vadd.f32 0.001143296, %v823_v39  ;;  %vm2441_vm9 = vmor %vm678_vm3, %vm679_vm7 }
 0x140   : > { %v675_v41 = vsub.f32 1.0, %v674_v56  ;;  %v2433_v0 = vmin.f32 %v850_v21, 16.0  ;;  %vm719_vm8 = vweird.f32 %v1995_v55  ;;  %v780_v2 = vmul.f32 %v779_v45, %v2350_v52 }
 0x141   : > { %v715_v1 = vsub.f32 1.0, %v714_v59  ;;  %v792_v3 = vadd.f32 1.0, %v791_v61  ;;  %v814_v6 = vmul.f32 %v813_v62, %v2408_v27  ;;  %v825_v7 = vmul.f32 %v824_v63, %v2408_v27  ;;  %vm2446_vm11 = vmor %vm718_vm4, %vm719_vm8 }
 0x142   : > { %v1997_v4 = vpop.eup %1996  ;;  %v676_v5 = vmul.f32 %v1993_v33, %v675_v41  ;;  %v852_v8 = vmul.f32 2.1237322e-06, %v2433_v0  ;;  %vm758_vm10 = vweird.f32 %v752_v29  ;;  %vm2450_vm13 = vcmp.eq.f32.partialorder %v762_v58, 8.507059e+37 }
 0x143   : > { %v716_v10 = vmul.f32 %v1995_v55, %v715_v1  ;;  %v754_v11 = vmul.f32 %v1997_v4, %v752_v29  ;;  %1998 = vrcp.f32 %v792_v3  ;;  %vm759_vm12 = vweird.f32 %v1997_v4 }
 0x144   : > { %v677_v52 = vadd.f32 %v1993_v33, %v676_v5  ;;  %v765_v12 = vor.u32 1.1754944e-38, %v764_v60  ;;  %v815_v49 = vadd.f32 0.0036580483, %v814_v6  ;;  %v826_v19 = vadd.f32 0.014752088, %v825_v7  ;;  %vm2467_vm15 = vmor %vm758_vm10, %vm759_vm12 }
 0x145   : > { %v717_v15 = vadd.f32 %v1995_v55, %v716_v10  ;;  %v755_v17 = vsub.f32 1.0, %v754_v11  ;;  %v781_v21 = vadd.f32 1.1283791, %v780_v2  ;;  %v853_v22 = vadd.f32 0.00028619796, %v852_v8 }
 0x146   : > { %v681_v20 = vsel %vm2441_vm9, %v1993_v33, %v677_v52  ;;  %v2457_v16 = vmul.f32 0.70710677, %v2411_v36  ;;  %vm798_vm14 = vweird.f32 %v792_v3  ;;  %v802_v45 = vand.u32 2147483647, %v792_v3 }
 0x147   : > { %v686_v23 = vsel %vm2419_vm5, %v685_v44, %v681_v20  ;;  %v721_v24 = vsel %vm2446_vm11, %v1995_v55, %v717_v15  ;;  %v756_v25 = vmul.f32 %v1997_v4, %v755_v17  ;;  %v827_v33 = vmul.f32 %v826_v19, %v2408_v27 }
 0x148   : > { %v687_v26 = vmul.f32 %v686_v23, %v662_v31  ;;  %v726_v28 = vsel %vm2428_vm6, %v725_v57, %v721_v24  ;;  %v816_v53 = vmul.f32 %v815_v49, %v2408_v27  ;;  %v854_v39 = vmul.f32 %v853_v22, %v2433_v0 }
 0x149   : > { %v1999_v34 = vpop.eup %1998  ;;  %v727_v44 = vmul.f32 %v726_v28, %v702_v32  ;;  %v757_v47 = vadd.f32 %v1997_v4, %v756_v25  ;;  %v828_v56 = vadd.f32 0.112945676, %v827_v33  ;;  %v863_v40 = vmul.f32 3.8918573e-05, %v2433_v0 }
 0x14a   : > { %v1774_v31 = vclamps-f32 %v687_v26, 1.0  ;;  %v794_v55 = vmul.f32 %v1999_v34, %v792_v3  ;;  %vm799_vm0 = vweird.f32 %v1999_v34  ;;  %v804_v58 = vand.u32 2147483648, %v792_v3 }
 0x14b   : > { %v1775_v29 = vclamps-f32 %v727_v44, 1.0  ;;  %v761_v57 = vsel %vm2467_vm15, %v1997_v4, %v757_v47  ;;  %v829_v61 = vmul.f32 %v828_v56, %v2408_v27  ;;  %v817_v63 = vadd.f32 0.05243302, %v816_v53  ;;  %vm2486_vm1 = vmor %vm798_vm14, %vm799_vm0 }
 0x14c   : > { %v970_v59 = vadd.f32 1.0, %v1774_v31  ;;  %v766_v32 = vsel %vm2450_vm13, %v765_v12, %v761_v57  ;;  %v795_v60 = vsub.f32 1.0, %v794_v55  ;;  %v855_v1 = vadd.f32 0.0036580483, %v854_v39 }
 0x14d   : > { %v971_v41 = vadd.f32 1.0, %v1775_v29  ;;  %v767_v62 = vmul.f32 %v766_v32, %v2424_v46  ;;  %v830_v6 = vadd.f32 0.4994258, %v829_v61  ;;  %v864_v7 = vadd.f32 0.001143296, %v863_v40 }
 0x14e   : > { %v978_v2 = vmul.f32 %v970_v59, %v2346_v50  ;;  %v796_v5 = vmul.f32 %v1999_v34, %v795_v60  ;;  %v782_v8 = vmul.f32 %v781_v21, %v2329_v42  ;;  %vm803_vm2 = vcmp.eq.f32.partialorder %v802_v45, 8.507059e+37 }
 0x14f   : > { %v979_v4 = vmul.f32 %v971_v41, %v2402_v48  ;;  %v805_v10 = vor.u32 1.1754944e-38, %v804_v58  ;;  %v1776_v46 = vclamps-f32 %v767_v62, 1.0  ;;  %v831_v52 = vmul.f32 %v830_v6, %v2408_v27 }
 0x150   : > { %v797_v11 = vadd.f32 %v1999_v34, %v796_v5  ;;  %v865_v50 = vmul.f32 %v864_v7, %v2433_v0  ;;  %v818_v14 = vmul.f32 %v817_v63, %v2408_v27  ;;  %v856_v48 = vmul.f32 %v855_v1, %v2433_v0 }
 0x151   : > { %v986_v13 = vpack.c.bf16 %v979_v4, %v978_v2  ;;  %v2496_v3 = vadd.f32 1.0, %v831_v52  ;;  %v890_v15 = vmul.f32 %v2457_v16, %v2457_v16  ;;  %v2501_v49 = vmul.f32 0.70710677, %v2414_v51 }
 0x152   : > { %v801_v42 = vsel %vm2486_vm1, %v1999_v34, %v797_v11  ;;  %v866_v12 = vadd.f32 0.014752088, %v865_v50  ;;  %v636_v19 = vmul.f32 0.5, %v2315_v37  ;;  %v972_v21 = vadd.f32 1.0, %v1776_v46 }
 0x153   : > { %1062 = vmatmul.bf16.vlgmr.msra.gmra.mxu0 %v986_v13  ;;  %v806_v17 = vsel %vm803_vm2, %v805_v10, %v801_v42  ;;  %2000 = vrcp.f32 %v2496_v3  ;;  %v819_v22 = vadd.f32 0.18741608, %v818_v14  ;;  %v2506_v24 = vmin.f32 %v890_v15, 16.0 }
 0x154   : > { %v807_v20 = vmul.f32 %v806_v17, %v782_v8  ;;  %v867_v23 = vmul.f32 %v866_v12, %v2433_v0  ;;  %v637_v25 = vmul.f32 0.5, %v2318_v38  ;;  %v857_v28 = vadd.f32 0.05243302, %v856_v48 }
 0x155   : > { %v930_v45 = vmul.f32 %v2501_v49, %v2501_v49  ;;  %v980_v34 = vmul.f32 %v972_v21, %v636_v19  ;;  %v892_v37 = vmul.f32 2.1237322e-06, %v2506_v24  ;;  %v903_v44 = vmul.f32 3.8918573e-05, %v2506_v24 }
 0x156   : > { %v1777_v26 = vclamps-f32 %v807_v20, 1.0  ;;  %v868_v30 = vadd.f32 0.112945676, %v867_v23  ;;  %v820_v47 = vmul.f32 %v819_v22, %v2408_v27  ;;  %v858_v55 = vmul.f32 %v857_v28, %v2433_v0 }
 0x157   : > { %v2515_v39 = vmin.f32 %v930_v45, 16.0  ;;  %v893_v56 = vadd.f32 0.00028619796, %v892_v37  ;;  %v904_v40 = vadd.f32 0.001143296, %v903_v44  ;;  %vm838_vm3 = vweird.f32 %v2496_v3 }
 0x158   : > { %v973_v33 = vadd.f32 1.0, %v1777_v26  ;;  %v869_v53 = vmul.f32 %v868_v30, %v2433_v0  ;;  %v844_v41 = vand.u32 2147483648, %v2496_v3  ;;  %v859_v7 = vadd.f32 0.18741608, %v858_v55 }
 0x159   : > { %v2001_v31 = vpop.eup %2000  ;;  %v932_v58 = vmul.f32 2.1237322e-06, %v2515_v39  ;;  %v894_v27 = vmul.f32 %v893_v56, %v2506_v24  ;;  %v905_v32 = vmul.f32 %v904_v40, %v2506_v24  ;;  %v943_v60 = vmul.f32 3.8918573e-05, %v2515_v39 }
 0x15a   : > { %v981_v38 = vmul.f32 %v973_v33, %v637_v25  ;;  %v834_v29 = vmul.f32 %v2001_v31, %v2496_v3  ;;  %v870_v57 = vadd.f32 0.4994258, %v869_v53  ;;  %vm839_vm4 = vweird.f32 %v2001_v31 }
 0x15b   : > { %v933_v63 = vadd.f32 0.00028619796, %v932_v58  ;;  %v895_v1 = vadd.f32 0.0036580483, %v894_v27  ;;  %v906_v2 = vadd.f32 0.014752088, %v905_v32  ;;  %vm2533_vm5 = vmor %vm838_vm3, %vm839_vm4  ;;  %v860_v19 = vmul.f32 %v859_v7, %v2433_v0 }
 0x15c   : > { %v987_v59 = vpack.c.bf16 %v981_v38, %v980_v34  ;;  %v835_v61 = vsub.f32 1.0, %v834_v29  ;;  %v871_v62 = vmul.f32 %v870_v57, %v2433_v0  ;;  %v944_v5 = vadd.f32 0.001143296, %v943_v60 }
 0x15d   : > { %v934_v8 = vmul.f32 %v933_v63, %v2515_v39  ;;  %v842_v9 = vand.u32 2147483647, %v2496_v3  ;;  %v896_v10 = vmul.f32 %v895_v1, %v2506_v24  ;;  %v907_v46 = vmul.f32 %v906_v2, %v2506_v24 }
 0x15e   : > { %1067 = vmatmul.bf16.vlgmr.msra.gmra.mxu1 %v987_v59  ;;  %v836_v6 = vmul.f32 %v2001_v31, %v835_v61  ;;  %v872_v4 = vadd.f32 1.0, %v871_v62  ;;  %v945_v11 = vmul.f32 %v944_v5, %v2515_v39  ;;  %v821_v13 = vadd.f32 1.1283791, %v820_v47 }
 0x15f   : > { %v845_v14 = vor.u32 1.1754944e-38, %v844_v41  ;;  %v908_v48 = vadd.f32 0.112945676, %v907_v46  ;;  %v897_v42 = vadd.f32 0.05243302, %v896_v10  ;;  %vm843_vm6 = vcmp.eq.f32.partialorder %v842_v9, 8.507059e+37 }
 0x160   : > { %v837_v52 = vadd.f32 %v2001_v31, %v836_v6  ;;  %2002 = vrcp.f32 %v872_v4  ;;  %v935_v12 = vadd.f32 0.0036580483, %v934_v8  ;;  %v946_v15 = vadd.f32 0.014752088, %v945_v11 }
 0x161   : > { %v909_v20 = vmul.f32 %v908_v48, %v2506_v24  ;;  %v822_v22 = vmul.f32 %v821_v13, %v2353_v54  ;;  %v898_v28 = vmul.f32 %v897_v42, %v2506_v24  ;;  %v861_v45 = vadd.f32 1.1283791, %v860_v19 }
 0x162   : > { %v841_v17 = vsel %vm2533_vm5, %v2001_v31, %v837_v52  ;;  %v936_v3 = vmul.f32 %v935_v12, %v2515_v39  ;;  %v947_v21 = vmul.f32 %v946_v15, %v2515_v39  ;;  %vm878_vm7 = vweird.f32 %v872_v4 }
 0x163   : > { %v910_v23 = vadd.f32 0.4994258, %v909_v20  ;;  %v846_v26 = vsel %vm843_vm6, %v845_v14, %v841_v17  ;;  %v882_v0 = vand.u32 2147483647, %v872_v4  ;;  %v884_v37 = vand.u32 2147483648, %v872_v4 }
 0x164   : > { %v948_v30 = vadd.f32 0.112945676, %v947_v21  ;;  %v937_v44 = vadd.f32 0.05243302, %v936_v3  ;;  %v847_v53 = vmul.f32 %v846_v26, %v822_v22  ;;  %v899_v38 = vadd.f32 0.18741608, %v898_v28 }
 0x165   : > { %v911_v34 = vmul.f32 %v910_v23, %v2506_v24  ;;  %v885_v40 = vor.u32 1.1754944e-38, %v884_v37  ;;  %v862_v59 = vmul.f32 %v861_v45, %v2381_v35  ;;  %vm883_vm10 = vcmp.eq.f32.partialorder %v882_v0, 8.507059e+37 }
 0x166   : > { %v2003_v25 = vpop.eup %2002  ;;  %v949_v47 = vmul.f32 %v948_v30, %v2515_v39  ;;  %v938_v29 = vmul.f32 %v937_v44, %v2515_v39  ;;  %v1778_v58 = vclamps-f32 %v847_v53, 1.0  ;;  %v900_v32 = vmul.f32 %v899_v38, %v2506_v24 }
 0x167   : > { %v874_v33 = vmul.f32 %v2003_v25, %v872_v4  ;;  %vm879_vm8 = vweird.f32 %v2003_v25  ;;  %v912_v54 = vadd.f32 1.0, %v911_v34  ;;  %v638_v1 = vmul.f32 0.5, %v2332_v43 }
 0x168   : > { %v950_v55 = vadd.f32 0.4994258, %v949_v47  ;;  %vm880_vm9 = vmor %vm878_vm7, %vm879_vm8  ;;  %v939_v62 = vadd.f32 0.18741608, %v938_v29  ;;  %v974_v5 = vadd.f32 1.0, %v1778_v58  ;;  %v639_v4 = vmul.f32 0.5, %v2371_v18 }
 0x169   : > { %v875_v31 = vsub.f32 1.0, %v874_v33  ;;  %2004 = vrcp.f32 %v912_v54  ;;  %v901_v6 = vadd.f32 1.1283791, %v900_v32  ;;  %v922_v35 = vand.u32 2147483647, %v912_v54 }
 0x16a   : > { %v951_v57 = vmul.f32 %v950_v55, %v2515_v39  ;;  %v924_v9 = vand.u32 2147483648, %v912_v54  ;;  %vm918_vm11 = vweird.f32 %v912_v54  ;;  %v940_v24 = vmul.f32 %v939_v62, %v2515_v39 }
 0x16b   : > { %v876_v56 = vmul.f32 %v2003_v25, %v875_v31  ;;  %v982_v11 = vmul.f32 %v974_v5, %v638_v1  ;;  %v902_v50 = vmul.f32 %v901_v6, %v2457_v16  ;;  %vm923_vm14 = vcmp.eq.f32.partialorder %v922_v35, 8.507059e+37 }
 0x16c   : > { %v952_v60 = vadd.f32 1.0, %v951_v57  ;;  %v925_v14 = vor.u32 1.1754944e-38, %v924_v9  ;;  %v941_v42 = vadd.f32 1.1283791, %v940_v24  ;;  %v640_v30 = vmul.f32 0.5, %v2411_v36 }
 0x16d   : > { %v877_v27 = vadd.f32 %v2003_v25, %v876_v56  ;;  %v641_v34 = vmul.f32 0.5, %v2414_v51 }
 0x16e   : > { %2006 = vrcp.f32 %v952_v60  ;;  %vm958_vm15 = vweird.f32 %v952_v60  ;;  %v964_v12 = vand.u32 2147483648, %v952_v60  ;;  %v962_v19 = vand.u32 2147483647, %v952_v60 }
 0x16f   : > { %v881_v61 = vsel %vm880_vm9, %v2003_v25, %v877_v27  ;;  %v2005_v63 = vpop.eup %2004  ;;  %v942_v22 = vmul.f32 %v941_v42, %v2501_v49 }
 0x170   : > { %v886_v41 = vsel %vm883_vm10, %v885_v40, %v881_v61  ;;  %v914_v7 = vmul.f32 %v2005_v63, %v912_v54  ;;  %vm919_vm12 = vweird.f32 %v2005_v63  ;;  %v965_v16 = vor.u32 1.1754944e-38, %v964_v12 }
 0x171   : > { %v887_v2 = vmul.f32 %v886_v41, %v862_v59  ;;  %vm920_vm13 = vmor %vm918_vm11, %vm919_vm12  ;;  %vm963_vm2 = vcmp.eq.f32.partialorder %v962_v19, 8.507059e+37 }
 0x172   : > { %v915_v10 = vsub.f32 1.0, %v914_v7 }
 0x173   : > { %v1779_v8 = vclamps-f32 %v887_v2, 1.0 }
 0x174   : > { %v2007_v52 = vpop.eup %2006  ;;  %v916_v43 = vmul.f32 %v2005_v63, %v915_v10 }
 0x175   : > { %v975_v46 = vadd.f32 1.0, %v1779_v8  ;;  %v954_v48 = vmul.f32 %v2007_v52, %v952_v60  ;;  %vm959_vm0 = vweird.f32 %v2007_v52 }
 0x176   : > { %v917_v18 = vadd.f32 %v2005_v63, %v916_v43  ;;  %vm960_vm1 = vmor %vm958_vm15, %vm959_vm0 }
 0x177   : > { %v983_v13 = vmul.f32 %v975_v46, %v639_v4  ;;  %v955_v17 = vsub.f32 1.0, %v954_v48 }
 0x178   : > { %v921_v39 = vsel %vm920_vm13, %v2005_v63, %v917_v18  ;;  %v1092_v18 = vld [vmem:[#allocation2 + $0x4] sm:$0x1] }
 0x179   : > { %v988_v15 = vpack.c.bf16 %v983_v13, %v982_v11  ;;  %v926_v20 = vsel %vm923_vm14, %v925_v14, %v921_v39  ;;  %v956_v3 = vmul.f32 %v2007_v52, %v955_v17 }
 0x17a   : > { %v927_v21 = vmul.f32 %v926_v20, %v902_v50 }
 0x17b   : > { %1072 = vmatmul.bf16.vlgmr.msra.gmra.mxu2 %v988_v15  ;;  %v957_v23 = vadd.f32 %v2007_v52, %v956_v3  ;;  %v1108_v15 = vld [vmem:[#allocation2 + $0x5] sm:$0x1] }
 0x17c   : > { %v1780_v25 = vclamps-f32 %v927_v21, 1.0 }
 0x17d   : > { %v961_v26 = vsel %vm960_vm1, %v2007_v52, %v957_v23 }
 0x17e   : > { %v966_v28 = vsel %vm963_vm2, %v965_v16, %v961_v26  ;;  %v976_v33 = vadd.f32 1.0, %v1780_v25 }
 0x17f   : > { %v967_v45 = vmul.f32 %v966_v28, %v942_v22 }
 0x180   : > { %v984_v44 = vmul.f32 %v976_v33, %v640_v30 }
 0x181   : > { %v1781_v0 = vclamps-f32 %v967_v45, 1.0 }
 0x183   : > { %v977_v37 = vadd.f32 1.0, %v1781_v0 }
 0x185   : > { %v985_v47 = vmul.f32 %v977_v37, %v641_v34 }
 0x187   : > { %v989_v53 = vpack.c.bf16 %v985_v47, %v984_v44 }
 0x189   : > { %1077 = vmatmul.bf16.vlgmr.msra.gmra.mxu3 %v989_v53 }
 0x1d0   : > { %v1063_v31 = vpop.f32.mrf.mxu0 }
 0x1d1   : > { %1084 = vst [vmem:[#allocation4] sm:$0xff] %v1063_v31  ;;  %v1109_v56 = vmul.f32 %v1063_v31, %v1063_v31 }
 0x1d8   : > { %v1065_v54 = vpop.f32.mrf.mxu0 }
 0x1d9   : > { %1085 = vst [vmem:[#allocation4 + $0x18] sm:$0xff] %v1065_v54  ;;  %v1110_v55 = vmul.f32 %v1065_v54, %v1065_v54  ;;  %v1093_v40 = vadd.f32 %v1065_v54, %v1063_v31 }
 0x1db   : > { %v1068_v49 = vpop.f32.mrf.mxu1  ;;  %v1117_v51 = vadd.f32 %v1110_v55, %v1109_v56 }
 0x1dc   : > { %1086 = vst [vmem:[#allocation4 + $0x10] sm:$0xff] %v1068_v49  ;;  %v1111_v29 = vmul.f32 %v1068_v49, %v1068_v49  ;;  %v1094_v57 = vadd.f32 %v1093_v40, %v1068_v49 }
 0x1de   : > { %v1118_v58 = vadd.f32 %v1117_v51, %v1111_v29 }
 0x1e3   : > { %v1070_v38 = vpop.f32.mrf.mxu1 }
 0x1e4   : > { %1087 = vst [vmem:[#allocation4 + $0x20] sm:$0xff] %v1070_v38  ;;  %v1095_v27 = vadd.f32 %v1094_v57, %v1070_v38  ;;  %v1112_v32 = vmul.f32 %v1070_v38, %v1070_v38 }
 0x1e6   : > { %v1119_v60 = vadd.f32 %v1118_v58, %v1112_v32 }
 0x1fe   : > { %v1073_v36 = vpop.f32.mrf.mxu2 }
 0x1ff   : > { %1088 = vst [vmem:[#allocation4 + $0x28] sm:$0xff] %v1073_v36  ;;  %v1113_v61 = vmul.f32 %v1073_v36, %v1073_v36  ;;  %v1096_v41 = vadd.f32 %v1095_v27, %v1073_v36 }
 0x201   : > { %v1120_v62 = vadd.f32 %v1119_v60, %v1113_v61 }
 0x206   : > { %v1075_v59 = vpop.f32.mrf.mxu2 }
 0x207   : > { %1089 = vst [vmem:[#allocation4 + $0x8] sm:$0xff] %v1075_v59  ;;  %v1097_v1 = vadd.f32 %v1096_v41, %v1075_v59  ;;  %v1114_v2 = vmul.f32 %v1075_v59, %v1075_v59 }
 0x209   : > { %v1121_v5 = vadd.f32 %v1120_v62, %v1114_v2 }
 0x20c   : > { %v1078_v63 = vpop.f32.mrf.mxu3 }
 0x20d   : > { %1090 = vst [vmem:[#allocation4 + $0x30] sm:$0xff] %v1078_v63  ;;  %v1115_v6 = vmul.f32 %v1078_v63, %v1078_v63  ;;  %v1098_v7 = vadd.f32 %v1097_v1, %v1078_v63 }
 0x20f   : > { %v1122_v4 = vadd.f32 %v1121_v5, %v1115_v6 }
 0x214   : > { %v1080_v8 = vpop.f32.mrf.mxu3 }
 0x215   : > { %1091 = vst [vmem:[#allocation4 + $0x38] sm:$0xff] %v1080_v8  ;;  %v1099_v35 = vadd.f32 %v1098_v7, %v1080_v8  ;;  %v1116_v9 = vmul.f32 %v1080_v8, %v1080_v8 }
 0x217   : > { %v1100_v10 = vrot.slane %v1099_v35, 4  ;;  %v1123_v24 = vadd.f32 %v1122_v4, %v1116_v9 }
 0x219   : > { %v1101_v46 = vadd.f32 %v1100_v10, %v1099_v35  ;;  %v1124_v11 = vrot.slane %v1123_v24, 4 }
 0x21b   : > { %v1102_v52 = vrot.slane %v1101_v46, 2  ;;  %v1125_v50 = vadd.f32 %v1124_v11, %v1123_v24 }
 0x21d   : > { %v1103_v43 = vadd.f32 %v1102_v52, %v1101_v46  ;;  %v1126_v13 = vrot.slane %v1125_v50, 2 }
 0x21f   : > { %v1104_v14 = vrot.slane %v1103_v43, 1  ;;  %v1127_v48 = vadd.f32 %v1126_v13, %v1125_v50 }
 0x221   : > { %v1105_v42 = vadd.f32 %v1104_v14, %v1103_v43  ;;  %v1128_v12 = vrot.slane %v1127_v48, 1 }
 0x223   : > { %v1106_v17 = vadd.f32 %v1105_v42, %v1092_v18  ;;  %v1129_v19 = vadd.f32 %v1128_v12, %v1127_v48 }
 0x225   : > { %1107 = vst [vmem:[#allocation2 + $0x4] sm:$0x1] %v1106_v17  ;;  %v1130_v39 = vadd.f32 %v1129_v19, %v1108_v15 }
 0x227   : > { %1131 = vst [vmem:[#allocation2 + $0x5] sm:$0x1] %v1130_v39 }
 0x228 PF: > { %p1814_p12 = scmp.ne.s32.totalorder %s2172_s27, 2 }
 0x22a   : > { %1135 = sbr.rel (%p1814_p12) target bundleno = 723 (0x2d3), region = 84 }
 0x22f   : > { %v1140_v20 = vld [vmem:[#allocation2 + $0x4] sm:$0x1]  ;;  %v1142_v3 = vld [vmem:[#allocation2 + $0x5] sm:$0x1]  ;;  %v1147_v0 = vld [vmem:[%s2858_s6] sm:$0x1] }
 0x230   : > { %v1141_v21 = vmul.f32 0.015625, %v1140_v20  ;;  %v1143_v16 = vmul.f32 0.015625, %v1142_v3  ;;  %v1161_v53 = vld [vmem:[%s2859_s7] sm:$0x1]  ;;  %v1167_v54 = vld [vmem:[#allocation4] sm:$0xff]  ;;  %v1169_v55 = vld [vmem:[#allocation4 + $0x10] sm:$0xff] }
 0x231   : > { %v1168_v38 = vld [vmem:[#allocation4 + $0x18] sm:$0xff]  ;;  %v1170_v36 = vld [vmem:[#allocation4 + $0x20] sm:$0xff]  ;;  %v1171_v4 = vld [vmem:[#allocation4 + $0x28] sm:$0xff] }
 0x232   : > { %v1144_v22 = vmul.f32 %v1141_v21, %v1141_v21  ;;  %v1172_v35 = vld [vmem:[#allocation4 + $0x8] sm:$0xff] }
 0x234   : > { %v1145_v23 = vsub.f32 %v1143_v16, %v1144_v22 }
 0x236   : > { %v1146_v25 = vmax.f32 %v1145_v23, 0.0 }
 0x238   : > { %v1148_v26 = vadd.f32 1e-05, %v1146_v25 }
 0x23a   : > { %2010 = vrsqrt.f32 %v1148_v26  ;;  %vm1155_vm3 = vweird.f32 %v1148_v26 }
 0x240   : > { %v2011_v28 = vpop.eup %2010 }
 0x241   : > { %v1150_v30 = vmul.f32 %v2011_v28, %v1148_v26  ;;  %vm1156_vm4 = vweird.f32 %v2011_v28 }
 0x242   : > { %vm1157_vm5 = vmor %vm1155_vm3, %vm1156_vm4 }
 0x243   : > { %v1151_v45 = vmul.f32 %v2011_v28, %v1150_v30 }
 0x245   : > { %v1152_v33 = vmul.f32 0.5, %v1151_v45 }
 0x247   : > { %v1153_v34 = vsub.f32 1.5, %v1152_v33 }
 0x249   : > { %v1154_v37 = vmul.f32 %v2011_v28, %v1153_v34 }
 0x24b   : > { %v1158_v44 = vsel %vm1157_vm5, %v2011_v28, %v1154_v37 }
 0x24c   : > { %v1159_v47 = vmul.f32 %v1158_v44, %v1147_v0 }
 0x24e   : > { %1160 = vst [vmem:[#allocation2 + $0x6] sm:$0x1] %v1159_v47  ;;  %v1162_v31 = vmul.f32 %v1159_v47, %v1141_v21 }
 0x250   : > { %v1163_v49 = vsub.f32 %v1161_v53, %v1162_v31 }
 0x252   : > { %1164 = vst [vmem:[#allocation2 + $0x7] sm:$0x1] %v1163_v49 }
 0x255   : > { %v2565_v56 = vld [vmem:[#allocation2 + $0x6] ss:$0 sm:$0xff] }
 0x256   : > { %v1177_v40 = vmul.f32 %v2565_v56, %v1167_v54  ;;  %v1178_v51 = vmul.f32 %v2565_v56, %v1168_v38  ;;  %v1179_v29 = vmul.f32 %v2565_v56, %v1169_v55  ;;  %v1180_v57 = vmul.f32 %v2565_v56, %v1170_v36 }
 0x257   : > { %v1181_v43 = vmul.f32 %v2565_v56, %v1171_v4  ;;  %v1182_v15 = vmul.f32 %v2565_v56, %v1172_v35 }
 0x259   : > { %v2571_v58 = vld [vmem:[#allocation2 + $0x7] ss:$0 sm:$0xff] }
 0x25a   : > { %v2574_v59 = vadd.f32 %v2571_v58, %v1177_v40  ;;  %v2577_v27 = vadd.f32 %v2571_v58, %v1178_v51  ;;  %v2580_v32 = vadd.f32 %v2571_v58, %v1179_v29  ;;  %v2583_v60 = vadd.f32 %v2571_v58, %v1180_v57 }
 0x25b   : > { %v2628_v22 = vadd.f32 %v2571_v58, %v1181_v43  ;;  %v2631_v33 = vadd.f32 %v2571_v58, %v1182_v15 }
 0x25c   : > { %v2586_v61 = vmul.f32 0.70710677, %v2574_v59  ;;  %v2589_v41 = vmul.f32 0.70710677, %v2577_v27  ;;  %v2592_v62 = vmul.f32 0.70710677, %v2580_v32 }
 0x25d   : > { %v2599_v2 = vmul.f32 0.70710677, %v2583_v60  ;;  %v2641_v49 = vmul.f32 0.70710677, %v2628_v22 }
 0x25e   : > { %v1211_v63 = vmul.f32 %v2586_v61, %v2586_v61  ;;  %v1251_v1 = vmul.f32 %v2589_v41, %v2589_v41  ;;  %v1291_v5 = vmul.f32 %v2592_v62, %v2592_v62 }
 0x25f   : > { %v1331_v46 = vmul.f32 %v2599_v2, %v2599_v2 }
 0x260   : > { %v2603_v6 = vmin.f32 %v1211_v63, 16.0  ;;  %v2605_v7 = vmin.f32 %v1251_v1, 16.0  ;;  %v2607_v8 = vmin.f32 %v1291_v5, 16.0 }
 0x261   : > { %v2622_v20 = vmin.f32 %v1331_v46, 16.0 }
 0x262   : > { %v1213_v9 = vmul.f32 2.1237322e-06, %v2603_v6  ;;  %v1224_v10 = vmul.f32 3.8918573e-05, %v2603_v6  ;;  %v1253_v24 = vmul.f32 2.1237322e-06, %v2605_v7 }
 0x263   : > { %v1264_v11 = vmul.f32 3.8918573e-05, %v2605_v7  ;;  %v1293_v52 = vmul.f32 2.1237322e-06, %v2607_v8  ;;  %v1304_v50 = vmul.f32 3.8918573e-05, %v2607_v8 }
 0x264   : > { %v1214_v13 = vadd.f32 0.00028619796, %v1213_v9  ;;  %v1225_v14 = vadd.f32 0.001143296, %v1224_v10  ;;  %v1254_v48 = vadd.f32 0.00028619796, %v1253_v24 }
 0x265   : > { %v1265_v18 = vadd.f32 0.001143296, %v1264_v11  ;;  %v1294_v42 = vadd.f32 0.00028619796, %v1293_v52  ;;  %v1305_v12 = vadd.f32 0.001143296, %v1304_v50 }
 0x266   : > { %v1215_v17 = vmul.f32 %v1214_v13, %v2603_v6  ;;  %v1226_v19 = vmul.f32 %v1225_v14, %v2603_v6  ;;  %v1255_v39 = vmul.f32 %v1254_v48, %v2605_v7  ;;  %v1333_v44 = vmul.f32 2.1237322e-06, %v2622_v20 }
 0x267   : > { %v1266_v3 = vmul.f32 %v1265_v18, %v2605_v7  ;;  %v1295_v21 = vmul.f32 %v1294_v42, %v2607_v8  ;;  %v1306_v16 = vmul.f32 %v1305_v12, %v2607_v8  ;;  %v1344_v51 = vmul.f32 3.8918573e-05, %v2622_v20 }
 0x268   : > { %v1216_v23 = vadd.f32 0.0036580483, %v1215_v17  ;;  %v1227_v25 = vadd.f32 0.014752088, %v1226_v19  ;;  %v1256_v26 = vadd.f32 0.0036580483, %v1255_v39  ;;  %v1371_v48 = vmul.f32 %v2641_v49, %v2641_v49 }
 0x269   : > { %v1267_v28 = vadd.f32 0.014752088, %v1266_v3  ;;  %v1296_v30 = vadd.f32 0.0036580483, %v1295_v21  ;;  %v1307_v45 = vadd.f32 0.014752088, %v1306_v16 }
 0x26a   : > { %v1217_v34 = vmul.f32 %v1216_v23, %v2603_v6  ;;  %v1228_v0 = vmul.f32 %v1227_v25, %v2603_v6  ;;  %v1257_v37 = vmul.f32 %v1256_v26, %v2605_v7  ;;  %v1334_v1 = vadd.f32 0.00028619796, %v1333_v44  ;;  %v2663_v39 = vld [vmem:[#allocation5] sm:$0xff]   ;;  %v1173_v23 = vld [vmem:[#allocation4 + $0x30] sm:$0xff] }
 0x26b   : > { %v1268_v47 = vmul.f32 %v1267_v28, %v2605_v7  ;;  %v1297_v53 = vmul.f32 %v1296_v30, %v2607_v8  ;;  %v1308_v31 = vmul.f32 %v1307_v45, %v2607_v8  ;;  %v2650_v9 = vmul.f32 0.70710677, %v2631_v33 }
 0x26c   : > { %v1218_v54 = vadd.f32 0.05243302, %v1217_v34  ;;  %v1229_v38 = vadd.f32 0.112945676, %v1228_v0  ;;  %v1258_v55 = vadd.f32 0.05243302, %v1257_v37  ;;  %v1335_v14 = vmul.f32 %v1334_v1, %v2622_v20 }
 0x26d   : > { %v1269_v36 = vadd.f32 0.112945676, %v1268_v47  ;;  %v1298_v40 = vadd.f32 0.05243302, %v1297_v53  ;;  %v1309_v35 = vadd.f32 0.112945676, %v1308_v31  ;;  %v1849_v45 = vunpack.c.l.bf16 %v2663_v39 }
 0x26e   : > { %v1219_v29 = vmul.f32 %v1218_v54, %v2603_v6  ;;  %v1230_v57 = vmul.f32 %v1229_v38, %v2603_v6  ;;  %v1259_v63 = vmul.f32 %v1258_v55, %v2605_v7  ;;  %v1345_v43 = vadd.f32 0.001143296, %v1344_v51 }
 0x26f   : > { %v1270_v5 = vmul.f32 %v1269_v36, %v2605_v7  ;;  %v1299_v4 = vmul.f32 %v1298_v40, %v2607_v8  ;;  %v1310_v50 = vmul.f32 %v1309_v35, %v2607_v8  ;;  %v2672_v25 = vmul.f32 0.5, %v2574_v59 }
 0x270   : > { %v1220_v10 = vadd.f32 0.18741608, %v1219_v29  ;;  %v1231_v24 = vadd.f32 0.4994258, %v1230_v57  ;;  %v1260_v46 = vadd.f32 0.18741608, %v1259_v63  ;;  %v1346_v16 = vmul.f32 %v1345_v43, %v2622_v20 }
 0x271   : > { %v1271_v11 = vadd.f32 0.4994258, %v1270_v5  ;;  %v1300_v52 = vadd.f32 0.18741608, %v1299_v4  ;;  %v1311_v12 = vadd.f32 0.4994258, %v1310_v50  ;;  %v2686_v59 = vmul.f32 %v2565_v56, %v1173_v23 }
 0x272   : > { %v1232_v13 = vmul.f32 %v1231_v24, %v2603_v6  ;;  %v1221_v18 = vmul.f32 %v1220_v10, %v2603_v6  ;;  %v1261_v17 = vmul.f32 %v1260_v46, %v2605_v7  ;;  %v1411_v6 = vmul.f32 %v2650_v9, %v2650_v9 }
 0x273   : > { %v1272_v42 = vmul.f32 %v1271_v11, %v2605_v7  ;;  %v1301_v19 = vmul.f32 %v1300_v52, %v2607_v8  ;;  %v1312_v21 = vmul.f32 %v1311_v12, %v2607_v8  ;;  %v1336_v7 = vadd.f32 0.0036580483, %v1335_v14 }
 0x274   : > { %v2659_v15 = vadd.f32 1.0, %v1232_v13  ;;  %v2675_v26 = vmin.f32 %v1371_v48, 16.0  ;;  %v1222_v28 = vadd.f32 1.1283791, %v1221_v18  ;;  %v2678_v30 = vmul.f32 0.5, %v2577_v27 }
 0x275   : > { %v2665_v3 = vadd.f32 1.0, %v1272_v42  ;;  %v2682_v8 = vmul.f32 0.5, %v2580_v32  ;;  %v1262_v34 = vadd.f32 1.1283791, %v1261_v17  ;;  %v1302_v0 = vadd.f32 1.1283791, %v1301_v19 }
 0x276   : > { %2012 = vrcp.f32 %v2659_v15  ;;  %v1243_v37 = vand.u32 2147483647, %v2659_v15  ;;  %v2689_v44 = vadd.f32 1.0, %v1312_v21  ;;  %v1347_v47 = vadd.f32 0.014752088, %v1346_v16 }
 0x277   : > { %2014 = vrcp.f32 %v2665_v3  ;;  %v2691_v53 = vmin.f32 %v1411_v6, 16.0  ;;  %v1245_v27 = vand.u32 2147483648, %v2659_v15  ;;  %v1337_v31 = vmul.f32 %v1336_v7, %v2622_v20 }
 0x278   : > { %v1373_v32 = vmul.f32 2.1237322e-06, %v2675_v26  ;;  %v1384_v54 = vmul.f32 3.8918573e-05, %v2675_v26  ;;  %v1223_v38 = vmul.f32 %v1222_v28, %v2586_v61  ;;  %vm1239_vm6 = vweird.f32 %v2659_v15 }
 0x279   : > { %v1283_v55 = vand.u32 2147483647, %v2665_v3  ;;  %2016 = vrcp.f32 %v2689_v44  ;;  %v1285_v40 = vand.u32 2147483648, %v2665_v3  ;;  %v1348_v51 = vmul.f32 %v1347_v47, %v2622_v20 }
 0x27a   : > { %v1374_v29 = vadd.f32 0.00028619796, %v1373_v32  ;;  %v1385_v57 = vadd.f32 0.001143296, %v1384_v54  ;;  %vm2704_vm7 = vcmp.eq.f32.partialorder %v1243_v37, 8.507059e+37  ;;  %v1263_v61 = vmul.f32 %v1262_v34, %v2589_v41 }
 0x27b   : > { %vm1279_vm8 = vweird.f32 %v2665_v3  ;;  %v1246_v4 = vor.u32 1.1754944e-38, %v1245_v27  ;;  %v1303_v10 = vmul.f32 %v1302_v0, %v2592_v62  ;;  %v1349_v24 = vadd.f32 0.112945676, %v1348_v51 }
 0x27c   : > { %v2013_v36 = vpop.eup %2012  ;;  %v1338_v11 = vadd.f32 0.05243302, %v1337_v31  ;;  %v1375_v52 = vmul.f32 %v1374_v29, %v2675_v26  ;;  %v1386_v50 = vmul.f32 %v1385_v57, %v2675_v26  ;;  %vm2714_vm9 = vcmp.eq.f32.partialorder %v1283_v55, 8.507059e+37 }
 0x27d   : > { %v2015_v63 = vpop.eup %2014  ;;  %v1235_v1 = vmul.f32 %v2013_v36, %v2659_v15  ;;  %v1286_v41 = vor.u32 1.1754944e-38, %v1285_v40  ;;  %v1350_v14 = vmul.f32 %v1349_v24, %v2622_v20  ;;  %vm1240_vm10 = vweird.f32 %v2013_v36 }
 0x27e   : > { %v1275_v35 = vmul.f32 %v2015_v63, %v2665_v3  ;;  %v1376_v42 = vadd.f32 0.0036580483, %v1375_v52  ;;  %v1387_v62 = vadd.f32 0.014752088, %v1386_v50  ;;  %vm1280_vm11 = vweird.f32 %v2015_v63  ;;  %vm1241_vm12 = vmor %vm1239_vm6, %vm1240_vm10 }
 0x27f   : > { %v1236_v46 = vsub.f32 1.0, %v1235_v1  ;;  %v2017_v48 = vpop.eup %2016  ;;  %v1323_v19 = vand.u32 2147483647, %v2689_v44  ;;  %v1325_v16 = vand.u32 2147483648, %v2689_v44  ;;  %v1351_v6 = vadd.f32 0.4994258, %v1350_v14  ;;  %vm1281_vm13 = vmor %vm1279_vm8, %vm1280_vm11 }
 0x280   : > { %v1276_v43 = vsub.f32 1.0, %v1275_v35  ;;  %v1315_v17 = vmul.f32 %v2017_v48, %v2689_v44  ;;  %v1388_v23 = vmul.f32 %v1387_v62, %v2675_v26  ;;  %v1339_v34 = vmul.f32 %v1338_v11, %v2622_v20 }
 0x281   : > { %v1237_v18 = vmul.f32 %v2013_v36, %v1236_v46  ;;  %v1413_v0 = vmul.f32 2.1237322e-06, %v2691_v53  ;;  %v1352_v47 = vmul.f32 %v1351_v6, %v2622_v20  ;;  %v1377_v27 = vmul.f32 %v1376_v42, %v2675_v26  ;;  %v1174_v6 = vld [vmem:[#allocation4 + $0x38] sm:$0xff] }
 0x282   : > { %v1277_v12 = vmul.f32 %v2015_v63, %v1276_v43  ;;  %v1316_v28 = vsub.f32 1.0, %v1315_v17  ;;  %v1389_v31 = vadd.f32 0.112945676, %v1388_v23  ;;  %vm1320_vm14 = vweird.f32 %v2017_v48 }
 0x283   : > { %v1238_v21 = vadd.f32 %v2013_v36, %v1237_v18  ;;  %vm1319_vm15 = vweird.f32 %v2689_v44  ;;  %v1326_v29 = vor.u32 1.1754944e-38, %v1325_v16  ;;  %v1340_v5 = vadd.f32 0.18741608, %v1339_v34  ;;  %v2740_v44 = vld [vmem:[#allocation5 + $0x8] sm:$0xff]  }
 0x284   : > { %v1278_v7 = vadd.f32 %v2015_v63, %v1277_v12  ;;  %v1317_v54 = vmul.f32 %v2017_v48, %v1316_v28  ;;  %v1390_v57 = vmul.f32 %v1389_v31, %v2675_v26  ;;  %vm1321_vm0 = vmor %vm1319_vm15, %vm1320_vm14  ;;  %vm1324_vm1 = vcmp.eq.f32.partialorder %v1323_v19, 8.507059e+37 }
 0x285   : > { %v1242_v37 = vsel %vm1241_vm12, %v2013_v36, %v1238_v21  ;;  %v2736_v36 = vadd.f32 1.0, %v1352_v47  ;;  %v1414_v35 = vadd.f32 0.00028619796, %v1413_v0  ;;  %v1850_v50 = vunpack.c.h.bf16 %v2663_v39 }
 0x286   : > { %v1247_v32 = vsel %vm2704_vm7, %v1246_v4, %v1242_v37  ;;  %v1282_v15 = vsel %vm1281_vm13, %v2015_v63, %v1278_v7  ;;  %v1318_v51 = vadd.f32 %v2017_v48, %v1317_v54  ;;  %v1378_v63 = vadd.f32 0.05243302, %v1377_v27 }
 0x287   : > { %v1248_v55 = vmul.f32 %v1247_v32, %v1223_v38  ;;  %v1287_v40 = vsel %vm2714_vm9, %v1286_v41, %v1282_v15  ;;  %2018 = vrcp.f32 %v2736_v36  ;;  %v1391_v11 = vadd.f32 0.4994258, %v1390_v57 }
 0x288   : > { %v1288_v3 = vmul.f32 %v1287_v40, %v1263_v61  ;;  %v1322_v38 = vsel %vm1321_vm0, %v2017_v48, %v1318_v51  ;;  %v2744_v61 = vadd.f32 %v2571_v58, %v2686_v59  ;;  %v2748_v13 = vmul.f32 0.5, %v2583_v60 }
 0x289   : > { %v1815_v1 = vclamps-f32 %v1248_v55, 1.0  ;;  %v1327_v46 = vsel %vm1324_vm1, %v1326_v29, %v1322_v38  ;;  %v1341_v14 = vmul.f32 %v1340_v5, %v2622_v20  ;;  %v1379_v48 = vmul.f32 %v1378_v63, %v2675_v26 }
 0x28a   : > { %v1816_v4 = vclamps-f32 %v1288_v3, 1.0  ;;  %v1328_v43 = vmul.f32 %v1327_v46, %v1303_v10  ;;  %v1392_v18 = vmul.f32 %v1391_v11, %v2675_v26  ;;  %v1853_v59 = vunpack.c.l.bf16 %v2740_v44 }
 0x28b   : > { %v1531_v24 = vadd.f32 1.0, %v1815_v1  ;;  %v1415_v12 = vmul.f32 %v1414_v35, %v2691_v53  ;;  %v2763_v20 = vmul.f32 0.70710677, %v2744_v61  ;;  %v1854_v16 = vunpack.c.h.bf16 %v2740_v44 }
 0x28c   : > { %v1532_v52 = vadd.f32 1.0, %v1816_v4  ;;  %v1817_v62 = vclamps-f32 %v1328_v43, 1.0  ;;  %v2759_v10 = vadd.f32 1.0, %v1392_v18  ;;  %v1342_v7 = vadd.f32 1.1283791, %v1341_v14 }
 0x28d   : > { %v1539_v41 = vmul.f32 %v1531_v24, %v2672_v25  ;;  %v2019_v17 = vpop.eup %2018  ;;  %v1424_v25 = vmul.f32 3.8918573e-05, %v2691_v53  ;;  %v1380_v28 = vadd.f32 0.18741608, %v1379_v48  ;;  %v1416_v0 = vadd.f32 0.0036580483, %v1415_v12 }
 0x28e   : > { %v1540_v42 = vmul.f32 %v1532_v52, %v2678_v30  ;;  %v1533_v21 = vadd.f32 1.0, %v1817_v62  ;;  %v1355_v30 = vmul.f32 %v2019_v17, %v2736_v36  ;;  %2020 = vrcp.f32 %v2759_v10 }
 0x28f   : > { %v1563_v60 = vadd.f32 %v1849_v45, %v1539_v41  ;;  %v1363_v37 = vand.u32 2147483647, %v2736_v36  ;;  %v1365_v47 = vand.u32 2147483648, %v2736_v36  ;;  %v1425_v27 = vadd.f32 0.001143296, %v1424_v25 }
 0x290   : > { %v1564_v19 = vadd.f32 %v1850_v50, %v1540_v42  ;;  %v1541_v45 = vmul.f32 %v1533_v21, %v2682_v8  ;;  %v1356_v34 = vsub.f32 1.0, %v1355_v30  ;;  %v1451_v31 = vmul.f32 %v2763_v20, %v2763_v20 }
 0x291   : > { %v1571_v23 = vmul.f32 0.7072136, %v1563_v60  ;;  %vm1360_vm2 = vweird.f32 %v2019_v17  ;;  %v1184_v54 = vmul.f32 %v2565_v56, %v1174_v6  ;;  %v1343_v55 = vmul.f32 %v1342_v7, %v2599_v2 }
 0x292   : > { %v1572_v39 = vmul.f32 0.7072136, %v1564_v19  ;;  %v1565_v32 = vadd.f32 %v1853_v59, %v1541_v45  ;;  %v1357_v15 = vmul.f32 %v2019_v17, %v1356_v34  ;;  %v1381_v8 = vmul.f32 %v1380_v28, %v2675_v26 }
 0x293   : > { %1579 = vst [vmem:[#allocation11] sm:$0xff] %v1571_v23  ;;  %v1426_v40 = vmul.f32 %v1425_v27, %v2691_v53  ;;  %v2777_v3 = vmin.f32 %v1451_v31, 16.0  ;;  %vm1359_vm3 = vweird.f32 %v2736_v36  ;;  %v2781_v57 = vadd.f32 %v2571_v58, %v1184_v54  ;;  %v2808_v27 = vld [vmem:[#allocation5 + $0x10] sm:$0xff]  }
 0x294   : > { %1580 = vst [vmem:[#allocation11 + $0x8] sm:$0xff] %v1572_v39  ;;  %v1573_v51 = vmul.f32 0.7072136, %v1565_v32  ;;  %v1358_v29 = vadd.f32 %v2019_v17, %v1357_v15  ;;  %v2021_v1 = vpop.eup %2020  ;;  %vm1361_vm4 = vmor %vm1359_vm3, %vm1360_vm2  ;;  %v1366_v5 = vor.u32 1.1754944e-38, %v1365_v47  ;;  %v1417_v56 = vmul.f32 %v1416_v0, %v2691_v53 }
 0x295   : > { %v1427_v63 = vadd.f32 0.014752088, %v1426_v40  ;;  %v1453_v2 = vmul.f32 2.1237322e-06, %v2777_v3  ;;  %vm1364_vm5 = vcmp.eq.f32.partialorder %v1363_v37, 8.507059e+37  ;;  %v1395_v4 = vmul.f32 %v2021_v1, %v2759_v10 }
 0x296   : > { %1581 = vst [vmem:[#allocation11 + $0x10] sm:$0xff] %v1573_v51  ;;  %v1362_v26 = vsel %vm1361_vm4, %v2019_v17, %v1358_v29  ;;  %v1464_v38 = vmul.f32 3.8918573e-05, %v2777_v3  ;;  %v1382_v36 = vadd.f32 1.1283791, %v1381_v8  ;;  %v1405_v43 = vand.u32 2147483648, %v2759_v10 }
 0x297   : > { %v1367_v35 = vsel %vm1364_vm5, %v1366_v5, %v1362_v26  ;;  %v1428_v58 = vmul.f32 %v1427_v63, %v2691_v53  ;;  %v1454_v24 = vadd.f32 0.00028619796, %v1453_v2  ;;  %v1396_v11 = vsub.f32 1.0, %v1395_v4 }
 0x298   : > { %v1368_v46 = vmul.f32 %v1367_v35, %v1343_v55  ;;  %v1403_v52 = vand.u32 2147483647, %v2759_v10  ;;  %v1465_v50 = vadd.f32 0.001143296, %v1464_v38  ;;  %v2792_v48 = vmul.f32 0.70710677, %v2781_v57 }
 0x299   : > { %v1429_v41 = vadd.f32 0.112945676, %v1428_v58  ;;  %v1455_v14 = vmul.f32 %v1454_v24, %v2777_v3  ;;  %v1397_v42 = vmul.f32 %v2021_v1, %v1396_v11  ;;  %vm1400_vm6 = vweird.f32 %v2021_v1 }
 0x29a   : > { %v1818_v18 = vclamps-f32 %v1368_v46, 1.0  ;;  %v1466_v62 = vmul.f32 %v1465_v50, %v2777_v3  ;;  %v1383_v59 = vmul.f32 %v1382_v36, %v2641_v49  ;;  %v1418_v12 = vadd.f32 0.05243302, %v1417_v56 }
 0x29b   : > { %v1430_v17 = vmul.f32 %v1429_v41, %v2691_v53  ;;  %v1491_v60 = vmul.f32 %v2792_v48, %v2792_v48  ;;  %v1398_v19 = vadd.f32 %v2021_v1, %v1397_v42  ;;  %vm1399_vm7 = vweird.f32 %v2759_v10 }
 0x29c   : > { %v1534_v25 = vadd.f32 1.0, %v1818_v18  ;;  %v1467_v21 = vadd.f32 0.014752088, %v1466_v62  ;;  %vm1401_vm8 = vmor %vm1399_vm7, %vm1400_vm6  ;;  %v1406_v30 = vor.u32 1.1754944e-38, %v1405_v43  ;;  %v1456_v23 = vadd.f32 0.0036580483, %v1455_v14 }
 0x29d   : > { %v1431_v6 = vadd.f32 0.4994258, %v1430_v17  ;;  %v2800_v7 = vmin.f32 %v1491_v60, 16.0  ;;  %v1402_v49 = vsel %vm1401_vm8, %v2021_v1, %v1398_v19  ;;  %vm1404_vm9 = vcmp.eq.f32.partialorder %v1403_v52, 8.507059e+37 }
 0x29e   : > { %v1542_v28 = vmul.f32 %v1534_v25, %v2748_v13  ;;  %v1468_v39 = vmul.f32 %v1467_v21, %v2777_v3  ;;  %v1407_v45 = vsel %vm1404_vm9, %v1406_v30, %v1402_v49  ;;  %v1419_v31 = vmul.f32 %v1418_v12, %v2691_v53 }
 0x29f   : > { %v1432_v34 = vmul.f32 %v1431_v6, %v2691_v53  ;;  %v1493_v0 = vmul.f32 2.1237322e-06, %v2800_v7  ;;  %v1408_v37 = vmul.f32 %v1407_v45, %v1383_v59  ;;  %v1457_v13 = vmul.f32 %v1456_v23, %v2777_v3 }
 0x2a0   : > { %v1566_v10 = vadd.f32 %v1854_v16, %v1542_v28  ;;  %v1469_v47 = vadd.f32 0.112945676, %v1468_v39  ;;  %v1504_v15 = vmul.f32 3.8918573e-05, %v2800_v7  ;;  %v1199_v44 = vmul.f32 0.5, %v2628_v22 }
 0x2a1   : > { %v1433_v32 = vadd.f32 1.0, %v1432_v34  ;;  %v1819_v55 = vclamps-f32 %v1408_v37, 1.0  ;;  %v1494_v40 = vadd.f32 0.00028619796, %v1493_v0  ;;  %v1857_v51 = vunpack.c.l.bf16 %v2808_v27 }
 0x2a2   : > { %v1574_v54 = vmul.f32 0.7072136, %v1566_v10  ;;  %v1470_v8 = vmul.f32 %v1469_v47, %v2777_v3  ;;  %v1420_v1 = vadd.f32 0.18741608, %v1419_v31  ;;  %v1458_v5 = vadd.f32 0.05243302, %v1457_v13 }
 0x2a3   : > { %2022 = vrcp.f32 %v1433_v32  ;;  %v1535_v16 = vadd.f32 1.0, %v1819_v55  ;;  %v1505_v56 = vadd.f32 0.001143296, %v1504_v15  ;;  %v1495_v26 = vmul.f32 %v1494_v40, %v2800_v7 }
 0x2a4   : > { %1582 = vst [vmem:[#allocation11 + $0x18] sm:$0xff] %v1574_v54  ;;  %v1471_v29 = vadd.f32 0.4994258, %v1470_v8  ;;  %v1421_v58 = vmul.f32 %v1420_v1, %v2691_v53  ;;  %v1459_v22 = vmul.f32 %v1458_v5, %v2777_v3  ;;  %v1445_v14 = vand.u32 2147483648, %v1433_v32  ;;  %v1865_v1 = vld [vmem:[#allocation5 + $0x18] sm:$0xff]  }
 0x2a5   : > { %v1543_v63 = vmul.f32 %v1535_v16, %v1199_v44  ;;  %v1506_v4 = vmul.f32 %v1505_v56, %v2800_v7  ;;  %v1496_v52 = vadd.f32 0.0036580483, %v1495_v26  ;;  %v1443_v62 = vand.u32 2147483647, %v1433_v32 }
 0x2a6   : > { %v1472_v2 = vmul.f32 %v1471_v29, %v2777_v3  ;;  %v1422_v41 = vadd.f32 1.1283791, %v1421_v58  ;;  %v1460_v18 = vadd.f32 0.18741608, %v1459_v22  ;;  %vm1439_vm11 = vweird.f32 %v1433_v32 }
 0x2a7   : > { %v1567_v38 = vadd.f32 %v1857_v51, %v1543_v63  ;;  %v1507_v24 = vadd.f32 0.014752088, %v1506_v4  ;;  %v1497_v53 = vmul.f32 %v1496_v52, %v2800_v7  ;;  %v1446_v25 = vor.u32 1.1754944e-38, %v1445_v14 }
 0x2a8   : > { %v1473_v35 = vadd.f32 1.0, %v1472_v2  ;;  %v1461_v19 = vmul.f32 %v1460_v18, %v2777_v3  ;;  %v1423_v21 = vmul.f32 %v1422_v41, %v2650_v9  ;;  %vm1444_vm13 = vcmp.eq.f32.partialorder %v1443_v62, 8.507059e+37 }
 0x2a9   : > { %v2023_v36 = vpop.eup %2022  ;;  %v1575_v46 = vmul.f32 0.7072136, %v1567_v38  ;;  %v1508_v43 = vmul.f32 %v1507_v24, %v2800_v7  ;;  %v1498_v28 = vadd.f32 0.05243302, %v1497_v53  ;;  %v1200_v3 = vmul.f32 0.5, %v2631_v33 }
 0x2aa   : > { %v1435_v11 = vmul.f32 %v2023_v36, %v1433_v32  ;;  %2024 = vrcp.f32 %v1473_v35  ;;  %vm1440_vm10 = vweird.f32 %v2023_v36  ;;  %v1462_v34 = vadd.f32 1.1283791, %v1461_v19 }
 0x2ab   : > { %1583 = vst [vmem:[#allocation11 + $0x20] sm:$0xff] %v1575_v46  ;;  %v1509_v59 = vadd.f32 0.112945676, %v1508_v43  ;;  %vm1441_vm12 = vmor %vm1439_vm11, %vm1440_vm10  ;;  %v1485_v0 = vand.u32 2147483648, %v1473_v35  ;;  %v1483_v31 = vand.u32 2147483647, %v1473_v35  ;;  %v1499_v9 = vmul.f32 %v1498_v28, %v2800_v7 }
 0x2ac   : > { %v1436_v50 = vsub.f32 1.0, %v1435_v11  ;;  %v1858_v15 = vunpack.c.h.bf16 %v2808_v27  ;;  %vm1479_vm15 = vweird.f32 %v1473_v35  ;;  %v1463_v40 = vmul.f32 %v1462_v34, %v2763_v20 }
 0x2ad   : > { %v1510_v17 = vmul.f32 %v1509_v59, %v2800_v7  ;;  %v1486_v55 = vor.u32 1.1754944e-38, %v1485_v0  ;;  %vm1484_vm1 = vcmp.eq.f32.partialorder %v1483_v31, 8.507059e+37  ;;  %v1500_v51 = vadd.f32 0.18741608, %v1499_v9 }
 0x2ae   : > { %v1437_v42 = vmul.f32 %v2023_v36, %v1436_v50  ;;  %v1201_v2 = vmul.f32 0.5, %v2744_v61  ;;  %v1861_v4 = vunpack.c.l.bf16 %v1865_v1  ;;  %v1202_v18 = vmul.f32 0.5, %v2781_v57 }
 0x2af   : > { %v1511_v49 = vadd.f32 0.4994258, %v1510_v17  ;;  %v1501_v27 = vmul.f32 %v1500_v51, %v2800_v7  ;;  %v1862_v62 = vunpack.c.h.bf16 %v1865_v1 }
 0x2b0   : > { %v1438_v12 = vadd.f32 %v2023_v36, %v1437_v42  ;;  %v2025_v60 = vpop.eup %2024 }
 0x2b1   : > { %v1475_v6 = vmul.f32 %v2025_v60, %v1473_v35  ;;  %v1512_v10 = vmul.f32 %v1511_v49, %v2800_v7  ;;  %vm1480_vm14 = vweird.f32 %v2025_v60 }
 0x2b2   : > { %v1442_v30 = vsel %vm1441_vm12, %v2023_v36, %v1438_v12  ;;  %vm1481_vm0 = vmor %vm1479_vm15, %vm1480_vm14  ;;  %v1502_v36 = vadd.f32 1.1283791, %v1501_v27 }
 0x2b3   : > { %v1447_v23 = vsel %vm1444_vm13, %v1446_v25, %v1442_v30  ;;  %v1476_v45 = vsub.f32 1.0, %v1475_v6  ;;  %v1513_v32 = vadd.f32 1.0, %v1512_v10 }
 0x2b4   : > { %v1448_v39 = vmul.f32 %v1447_v23, %v1423_v21  ;;  %v1503_v7 = vmul.f32 %v1502_v36, %v2792_v48 }
 0x2b5   : > { %v1477_v47 = vmul.f32 %v2025_v60, %v1476_v45  ;;  %2026 = vrcp.f32 %v1513_v32  ;;  %v1525_v58 = vand.u32 2147483648, %v1513_v32  ;;  %v1523_v46 = vand.u32 2147483647, %v1513_v32 }
 0x2b6   : > { %v1820_v37 = vclamps-f32 %v1448_v39, 1.0  ;;  %vm1519_vm3 = vweird.f32 %v1513_v32 }
 0x2b7   : > { %v1478_v54 = vadd.f32 %v2025_v60, %v1477_v47  ;;  %v1526_v50 = vor.u32 1.1754944e-38, %v1525_v58  ;;  %vm1524_vm5 = vcmp.eq.f32.partialorder %v1523_v46, 8.507059e+37 }
 0x2b8   : > { %v1536_v13 = vadd.f32 1.0, %v1820_v37 }
 0x2b9   : > { %v1482_v44 = vsel %vm1481_vm0, %v2025_v60, %v1478_v54 }
 0x2ba   : > { %v1544_v8 = vmul.f32 %v1536_v13, %v1200_v3  ;;  %v1487_v16 = vsel %vm1484_vm1, %v1486_v55, %v1482_v44 }
 0x2bb   : > { %v1488_v33 = vmul.f32 %v1487_v16, %v1463_v40  ;;  %v2027_v63 = vpop.eup %2026 }
 0x2bc   : > { %v1568_v29 = vadd.f32 %v1858_v15, %v1544_v8  ;;  %v1515_v38 = vmul.f32 %v2027_v63, %v1513_v32  ;;  %vm1520_vm2 = vweird.f32 %v2027_v63 }
 0x2bd   : > { %v1821_v56 = vclamps-f32 %v1488_v33, 1.0  ;;  %vm1521_vm4 = vmor %vm1519_vm3, %vm1520_vm2 }
 0x2be   : > { %v1576_v5 = vmul.f32 0.7072136, %v1568_v29  ;;  %v1516_v20 = vsub.f32 1.0, %v1515_v38 }
 0x2bf   : > { %v1537_v26 = vadd.f32 1.0, %v1821_v56 }
 0x2c0   : > { %1584 = vst [vmem:[#allocation11 + $0x28] sm:$0xff] %v1576_v5  ;;  %v1517_v24 = vmul.f32 %v2027_v63, %v1516_v20 }
 0x2c1   : > { %v1545_v35 = vmul.f32 %v1537_v26, %v1201_v2 }
 0x2c2   : > { %v1518_v52 = vadd.f32 %v2027_v63, %v1517_v24 }
 0x2c3   : > { %v1569_v22 = vadd.f32 %v1861_v4, %v1545_v35 }
 0x2c4   : > { %v1522_v61 = vsel %vm1521_vm4, %v2027_v63, %v1518_v52 }
 0x2c5   : > { %v1577_v11 = vmul.f32 0.7072136, %v1569_v22  ;;  %v1527_v43 = vsel %vm1524_vm5, %v1526_v50, %v1522_v61 }
 0x2c6   : > { %v1528_v41 = vmul.f32 %v1527_v43, %v1503_v7 }
 0x2c7   : > { %1585 = vst [vmem:[#allocation11 + $0x30] sm:$0xff] %v1577_v11 }
 0x2c8   : > { %v1822_v14 = vclamps-f32 %v1528_v41, 1.0 }
 0x2ca   : > { %v1538_v42 = vadd.f32 1.0, %v1822_v14 }
 0x2cc   : > { %v1546_v59 = vmul.f32 %v1538_v42, %v1202_v18 }
 0x2ce   : > { %v1570_v53 = vadd.f32 %v1862_v62, %v1546_v59 }
 0x2d0   : > { %v1578_v12 = vmul.f32 0.7072136, %v1570_v53 }
 0x2d2   : > { %1586 = vst [vmem:[#allocation11 + $0x38] sm:$0xff] %v1578_v12 }
 0x2d3 PF: > { %p1952_p13 = scmp.eq.s32.totalorder %s1713_s5, 2  ;;  %s1604_s21 = sshll.u32 %s2860_s8, 4  ;;  %s1605_s21 = int_to_ptr.hbm [resolvable:$true] %s1604_s21 }
 0x2d4   : > { %s2188_s22 = smov [#allocation11]   ;;  %s2189_s24 = smov 128  }
 0x2d5   : > { %s1602_s23 = sshll.u32 %s2188_s22, 4  ;;  %s2190_s25 = smov 8   ;;  %s1603_s23 = int_to_ptr.vmem [resolvable:$true] %s1602_s23 }
 0x2d6   : > { %1927 = dma.vmem_to_hbm [thread:$0]  (%p1952_p13), %s1603_s23, 1024, %s1605_s21, [#allocation7], %s2189_s24, %s2189_s24, %s2190_s25  }
 0x2d7 PF: > { %p1953_p0 = scmp.ge.s32.totalorder %s2180_s29, 2  ;;  %p1954_p1 = scmp.eq.s32.totalorder %s1714_s30, 2 }
 0x2d9   : > { %p1942_p2 = pnand %p1954_p1, %p1953_p0 }
 0x2db   : > { %p1943_p3 = pneg %p1942_p2 }
 0x2dd   : > { %2167 = dma.done.wait (%p1943_p3), [#allocation7], 1024  }
 0x2de   : > { %2169 = vsyncadd (%p1943_p3), [#allocation7], 4294966272  ;;  %s25_s29 = sadd.s32 1, %s2180_s29   ;;  %s2883_s27 = smov %s2176_s28 }
 0x2df   : > { %p22_p4 = scmp.ge.s32.totalorder %s25_s29, 5   ;;  %s2884_s28 = smov %s2886_s9 }
 0x2e1   :  { %24 = sbr.rel (!%p22_p4) target bundleno = 6 (0x6), region = 133 }
 0x2e6   :  { %1626 = vsyncpa [#allocation6], 1 }
 0x2e7   :  { %1628 = vsyncpa [#allocation6 + $0x1], 1 }
 0x2e8   :  { %1629 = vsyncpa [#allocation9], 1 }
 0x2e9   :  { %1630 = vsyncpa [#allocation7], 1 }
 0x2ea   :  { %1632 = vsyncpa [#allocation7 + $0x1], 1 }

</bundles_post_ra>
